<compile_context>
chip_gen: v6e
topology: v6e:2x2x1
jax: 0.10.0
libtpu: 0.0.40
codegen_flags: <defaults>
</compile_context>

<pallas_src>
import jax
import jax.numpy as jnp
from jax.experimental import pallas as pl
from jax.experimental.pallas import tpu as pltpu
import numpy as np

# Small, module-consistent shapes.
B, T, D_IN, H, D_OUT = 2, 8, 1, 32, 1   # batch, seq, input_dim, hidden_dim, output_dim
LAYERS = 2


def sales_predictor_kernel(x_ref,                       # (BB, T)    float32
                           wih0_ref, whh0_ref, b0_ref,  # (1,4H) (H,4H) (1,4H)  g-cols pre-scaled x2
                           wih1_ref, whh1_ref, b1_ref,  # (H,4H) (H,4H) (1,4H)  g-cols pre-scaled x2
                           woutT_ref, bout_ref,         # (Dout,H) (1,Dout)
                           out_ref):                    # (BB, Dout)
    Bk, Tk = x_ref.shape
    Hk = whh0_ref.shape[0]

    whh0 = whh0_ref[...]
    wih1 = wih1_ref[...]
    whh1 = whh1_ref[...]

    # ---- Prologue (done once, off the serial recurrence) -------------------------
    # D_IN == 1  =>  layer-0 input projection is a broadcast multiply; fold in the
    # layer-0 bias.  Time-major (T, B, 4H) layout so each per-t read inside the
    # unrolled loop is a tile-aligned leading-dim slice.
    x_tb = x_ref[...].T                                          # (T, B)
    x_proj = (x_tb[:, :, None] * wih0_ref[...][None, :, :]
              + b0_ref[...][None, :, :])                         # (T, B, 4H)

    # Hoisted loop-invariant broadcasts (JAX does not CSE broadcast_in_dim).
    b1b = jnp.broadcast_to(b1_ref[...], (Bk, 4 * Hk))            # (B, 4H)

    # Lane mask selecting the "g" gate among packed (i, f, g, o) gates.
    lane = jax.lax.broadcasted_iota(jnp.int32, (Bk, 4 * Hk), 1)
    g_mask = (lane >= 2 * Hk) & (lane < 3 * Hk)

    def gate_activations(gates):
        # g-gate pre-activations were pre-scaled by 2 in the wrapper, so ONE
        # full-width sigmoid (EUP) pass yields every gate:
        #   i, f, o = sigmoid(z);   g = tanh(z) = 2*sigmoid(2z) - 1  (VPU fixup).
        sig = jax.nn.sigmoid(gates)
        return jnp.where(g_mask, 2.0 * sig - 1.0, sig)

    def apply_cell(acts, c):
        i = acts[:, 0 * Hk:1 * Hk]
        f = acts[:, 1 * Hk:2 * Hk]
        g = acts[:, 2 * Hk:3 * Hk]
        o = acts[:, 3 * Hk:4 * Hk]
        c_new = f * c + i * g
        h_new = o * jnp.tanh(c_new)
        return h_new, c_new

    h0 = jnp.zeros((Bk, Hk), jnp.float32)
    c0 = jnp.zeros((Bk, Hk), jnp.float32)
    h1 = jnp.zeros((Bk, Hk), jnp.float32)
    c1 = jnp.zeros((Bk, Hk), jnp.float32)

    # ---- Serial recurrence (T is small and static -> fully unrolled) ------------
    for t in range(Tk):
        # Layer-1 recurrent half first: depends only on last step's h1, so its MXU
        # push can issue under layer-0's EUP/VPU work (un-fused; no per-step concat).
        g1_rec = jnp.dot(h1, whh1, preferred_element_type=jnp.float32) + b1b

        # Layer 0: single (B,H)x(H,4H) matmul; input projection + bias precomputed.
        g0 = x_proj[t] + jnp.dot(h0, whh0, preferred_element_type=jnp.float32)
        h0, c0 = apply_cell(gate_activations(g0), c0)

        # Layer 1 input half (needs the fresh h0).
        g1 = g1_rec + jnp.dot(h0, wih1, preferred_element_type=jnp.float32)
        h1, c1 = apply_cell(gate_activations(g1), c1)

    # Head (D_OUT == 1): VPU multiply + lane reduction instead of a skinny (H,1)
    # MXU push.
    out_ref[...] = (jnp.sum(h1 * woutT_ref[...], axis=-1, keepdims=True)
                    + bout_ref[...])


def _num_tensorcores() -> int:
    """v7x has 2 TensorCores per chip; v5e/v6e have 1.  Fall back to 1 if unknown."""
    try:
        kind = jax.devices()[0].device_kind.lower()
    except Exception:
        return 1
    return 2 if "v7" in kind else 1


def _pick_batch_block(bsz: int, num_tc: int):
    """One batch block per TensorCore (the grid is a SERIAL loop per core, so extra
    blocks just re-run the 2*T-cell recurrence).  Blocks stay sublane-aligned."""
    if num_tc >= 2 and bsz % (8 * num_tc) == 0:
        nb = num_tc
    else:
        nb = 1
    bb = bsz // nb
    # Cap rows-per-block so x_proj / live state keeps vreg & VMEM pressure flat.
    while bb > 64 and bb % 16 == 0:
        nb *= 2
        bb //= 2
    return bb, nb


def _scale_g_columns(w):
    """Pre-scale the g-gate (tanh) columns by 2 -> enables tanh(z) = 2*sigmoid(2z)-1."""
    h = w.shape[-1] // 4
    return w.at[..., 2 * h:3 * h].multiply(2.0)


@jax.jit
def sales_predictor(x, params):
    wih0, whh0, b0, wih1, whh1, b1, wout, bout = params
    Bsz, Tsz, Din = x.shape
    assert Din == 1, "SalesPredictor kernel assumes input_dim == 1"
    assert wout.shape[1] == 1, "kernel head assumes output_dim == 1"

    # One-time (tiny) weight prep: scale g-gate columns by 2 and transpose the head
    # weight to a lane-dense (Dout, H) row.
    wih0s, whh0s, b0s = map(_scale_g_columns, (wih0, whh0, b0))
    wih1s, whh1s, b1s = map(_scale_g_columns, (wih1, whh1, b1))
    woutT = wout.T                                       # (Dout, H)

    # Drop the degenerate lane dim.
    x2d = x.reshape(Bsz, Tsz)                            # (B, T)

    BB, nb = _pick_batch_block(Bsz, _num_tensorcores())

    def rep(a):  # weight block: full array, resident across all grid steps
        n = a.ndim
        return pl.BlockSpec(a.shape, lambda b: (0,) * n)

    return pl.pallas_call(
        sales_predictor_kernel,
        out_shape=jax.ShapeDtypeStruct((Bsz, wout.shape[1]), jnp.float32),
        grid=(nb,),
        in_specs=[
            pl.BlockSpec((BB, Tsz), lambda b: (b, 0)),   # x
            rep(wih0s), rep(whh0s), rep(b0s),
            rep(wih1s), rep(whh1s), rep(b1s),
            rep(woutT), rep(bout),
        ],
        out_specs=pl.BlockSpec((BB, wout.shape[1]), lambda b: (b, 0)),
        compiler_params=pltpu.CompilerParams(dimension_semantics=("parallel",)),
    )(x2d, wih0s, whh0s, b0s, wih1s, whh1s, b1s, woutT, bout)


def init_params(key):
    """Deterministic PyTorch-style uniform(-1/sqrt(H), 1/sqrt(H)) init (pre-transposed)."""
    k = 1.0 / np.sqrt(H)
    keys = jax.random.split(key, 12)
    u = lambda kk, shape: jax.random.uniform(kk, shape, jnp.float32, -k, k)
    # Layer 0: W_ih (4H, D_in) stored transposed (D_in, 4H); biases combined b_ih+b_hh.
    wih0 = u(keys[0], (D_IN, 4 * H))
    whh0 = u(keys[1], (H, 4 * H))
    b0 = u(keys[2], (1, 4 * H)) + u(keys[3], (1, 4 * H))
    # Layer 1: input is layer-0 hidden state (size H).
    wih1 = u(keys[4], (H, 4 * H))
    whh1 = u(keys[5], (H, 4 * H))
    b1 = u(keys[6], (1, 4 * H)) + u(keys[7], (1, 4 * H))
    # Output linear layer.
    ko = 1.0 / np.sqrt(H)
    wout = jax.random.uniform(keys[8], (H, D_OUT), jnp.float32, -ko, ko)
    bout = jax.random.uniform(keys[9], (1, D_OUT), jnp.float32, -ko, ko)
    return (wih0, whh0, b0, wih1, whh1, b1, wout, bout)


def reference(x, params):
    """Pure-JAX reference of the same forward pass (eval-mode LSTM, unfused math)."""
    wih0, whh0, b0, wih1, whh1, b1, wout, bout = params

    def cell(x_t, h, c, wih, whh, b):
        g = x_t @ wih + h @ whh + b
        i = jax.nn.sigmoid(g[:, 0 * H:1 * H])
        f = jax.nn.sigmoid(g[:, 1 * H:2 * H])
        gg = jnp.tanh(g[:, 2 * H:3 * H])
        o = jax.nn.sigmoid(g[:, 3 * H:4 * H])
        c = f * c + i * gg
        return o * jnp.tanh(c), c

    h0 = c0 = h1 = c1 = jnp.zeros((x.shape[0], H), jnp.float32)
    for t in range(x.shape[1]):
        h0, c0 = cell(x[:, t, :], h0, c0, wih0, whh0, b0)
        h1, c1 = cell(h0, h1, c1, wih1, whh1, b1)
    return h1 @ wout + bout


if __name__ == "__main__":
    key = jax.random.PRNGKey(0)
    kx, kp, kx2 = jax.random.split(key, 3)
    params = init_params(kp)

    # Module-consistent small shape: (B=2, T=8, D_IN=1).
    x = jax.random.normal(kx, (B, T, D_IN), jnp.float32)
    out = jax.block_until_ready(sales_predictor(x, params))
    ref = reference(x, params)
    np.testing.assert_allclose(np.asarray(out), np.asarray(ref), rtol=1e-5, atol=1e-5)
    assert out.shape == (B, D_OUT)

    # Larger batch: single grid step on v5e/v6e; 2 blocks (one per TC) on v7x.
    xb = jax.random.normal(kx2, (16, T, D_IN), jnp.float32)
    outb = jax.block_until_ready(sales_predictor(xb, params))
    refb = reference(xb, params)
    np.testing.assert_allclose(np.asarray(outb), np.asarray(refb), rtol=1e-5, atol=1e-5)
    assert outb.shape == (16, D_OUT)

    print("KERNEL_OK")
</pallas_src>

<mosaic_0001>
module attributes {stable_mosaic.version = 11 : i64} {
  func.func @sales_predictor_kernel(%arg0: i32, %arg1: memref<2x8xf32, #tpu.memory_space<vmem>>, %arg2: memref<1x128xf32, #tpu.memory_space<vmem>>, %arg3: memref<32x128xf32, #tpu.memory_space<vmem>>, %arg4: memref<1x128xf32, #tpu.memory_space<vmem>>, %arg5: memref<32x128xf32, #tpu.memory_space<vmem>>, %arg6: memref<32x128xf32, #tpu.memory_space<vmem>>, %arg7: memref<1x128xf32, #tpu.memory_space<vmem>>, %arg8: memref<1x32xf32, #tpu.memory_space<vmem>>, %arg9: memref<1x1xf32, #tpu.memory_space<vmem>>, %arg10: memref<2x1xf32, #tpu.memory_space<vmem>>) attributes {dimension_semantics = [#tpu.dimension_semantics<parallel>], iteration_bounds = array<i64: 1>, scalar_prefetch = 0 : i64, scratch_operands = 0 : i64, tpu.core_type = #tpu.core_type<tc>, window_params = [{transform_indices = @transform_0, window_bounds = array<i64: 2, 8>}, {pipeline_mode = #tpu.pipeline_mode<synchronous>, transform_indices = @transform_1, window_bounds = array<i64: 1, 128>}, {pipeline_mode = #tpu.pipeline_mode<synchronous>, transform_indices = @transform_2, window_bounds = array<i64: 32, 128>}, {pipeline_mode = #tpu.pipeline_mode<synchronous>, transform_indices = @transform_3, window_bounds = array<i64: 1, 128>}, {pipeline_mode = #tpu.pipeline_mode<synchronous>, transform_indices = @transform_4, window_bounds = array<i64: 32, 128>}, {pipeline_mode = #tpu.pipeline_mode<synchronous>, transform_indices = @transform_5, window_bounds = array<i64: 32, 128>}, {pipeline_mode = #tpu.pipeline_mode<synchronous>, transform_indices = @transform_6, window_bounds = array<i64: 1, 128>}, {pipeline_mode = #tpu.pipeline_mode<synchronous>, transform_indices = @transform_7, window_bounds = array<i64: 1, 32>}, {pipeline_mode = #tpu.pipeline_mode<synchronous>, transform_indices = @transform_8, window_bounds = array<i64: 1, 1>}, {transform_indices = @transform_9, window_bounds = array<i64: 2, 1>}]} {
    %c0 = arith.constant 0 : index
    %c0_0 = arith.constant 0 : index
    %0 = vector.load %arg3[%c0, %c0_0] : memref<32x128xf32, #tpu.memory_space<vmem>>, vector<32x128xf32>
    %c0_1 = arith.constant 0 : index
    %c0_2 = arith.constant 0 : index
    %1 = vector.load %arg5[%c0_1, %c0_2] : memref<32x128xf32, #tpu.memory_space<vmem>>, vector<32x128xf32>
    %c0_3 = arith.constant 0 : index
    %c0_4 = arith.constant 0 : index
    %2 = vector.load %arg6[%c0_3, %c0_4] : memref<32x128xf32, #tpu.memory_space<vmem>>, vector<32x128xf32>
    %c0_5 = arith.constant 0 : index
    %c0_6 = arith.constant 0 : index
    %3 = vector.load %arg1[%c0_5, %c0_6] : memref<2x8xf32, #tpu.memory_space<vmem>>, vector<2x8xf32>
    %4 = tpu.transpose %3, [1, 0] : vector<2x8xf32> -> vector<8x2xf32>
    %5 = vector.shape_cast %4 : vector<8x2xf32> to vector<8x2x1xf32>
    %c0_7 = arith.constant 0 : index
    %c0_8 = arith.constant 0 : index
    %6 = vector.load %arg2[%c0_7, %c0_8] : memref<1x128xf32, #tpu.memory_space<vmem>>, vector<1x128xf32>
    %7 = vector.shape_cast %6 : vector<1x128xf32> to vector<1x1x128xf32>
    %8 = vector.broadcast %5 : vector<8x2x1xf32> to vector<8x2x128xf32>
    %9 = vector.broadcast %7 : vector<1x1x128xf32> to vector<8x2x128xf32>
    %10 = arith.mulf %8, %9 : vector<8x2x128xf32>
    %c0_9 = arith.constant 0 : index
    %c0_10 = arith.constant 0 : index
    %11 = vector.load %arg4[%c0_9, %c0_10] : memref<1x128xf32, #tpu.memory_space<vmem>>, vector<1x128xf32>
    %12 = vector.shape_cast %11 : vector<1x128xf32> to vector<1x1x128xf32>
    %13 = vector.broadcast %12 : vector<1x1x128xf32> to vector<8x2x128xf32>
    %14 = arith.addf %10, %13 : vector<8x2x128xf32>
    %c0_11 = arith.constant 0 : index
    %c0_12 = arith.constant 0 : index
    %15 = vector.load %arg7[%c0_11, %c0_12] : memref<1x128xf32, #tpu.memory_space<vmem>>, vector<1x128xf32>
    %16 = vector.shape_cast %15 : vector<1x128xf32> to vector<1x128xf32>
    %17 = vector.broadcast %16 : vector<1x128xf32> to vector<2x128xf32>
    %18 = tpu.iota {dimensions = array<i32: 1>} : vector<2x128xi32>
    %c64_i32 = arith.constant 64 : i32
    %19 = vector.broadcast %c64_i32 : i32 to vector<2x128xi32>
    %20 = arith.cmpi sge, %18, %19 : vector<2x128xi32>
    %c96_i32 = arith.constant 96 : i32
    %21 = vector.broadcast %c96_i32 : i32 to vector<2x128xi32>
    %22 = arith.cmpi slt, %18, %21 : vector<2x128xi32>
    %23 = arith.andi %20, %22 : vector<2x128xi1>
    %cst = arith.constant 0.000000e+00 : f32
    %24 = vector.broadcast %cst : f32 to vector<2x32xf32>
    %cst_13 = arith.constant 0.000000e+00 : f32
    %25 = vector.broadcast %cst_13 : f32 to vector<2x32xf32>
    %cst_14 = arith.constant 0.000000e+00 : f32
    %26 = vector.broadcast %cst_14 : f32 to vector<2x32xf32>
    %cst_15 = arith.constant 0.000000e+00 : f32
    %27 = vector.broadcast %cst_15 : f32 to vector<2x32xf32>
    %cst_16 = arith.constant dense<0.000000e+00> : vector<2x128xf32>
    %28 = tpu.matmul %26, %2, %cst_16 {dimension_numbers = #tpu.dot_dimension_numbers<[1], [0], [0], [1], [0, 0, 1, 1], [], []>} : vector<2x32xf32>, vector<32x128xf32>, vector<2x128xf32> -> vector<2x128xf32>
    %29 = arith.addf %28, %17 : vector<2x128xf32>
    %30 = vector.extract_strided_slice %14 {offsets = [0, 0, 0], sizes = [1, 2, 128], strides = [1, 1, 1]} : vector<8x2x128xf32> to vector<1x2x128xf32>
    %31 = vector.shape_cast %30 : vector<1x2x128xf32> to vector<2x128xf32>
    %cst_17 = arith.constant dense<0.000000e+00> : vector<2x128xf32>
    %32 = tpu.matmul %24, %0, %cst_17 {dimension_numbers = #tpu.dot_dimension_numbers<[1], [0], [0], [1], [0, 0, 1, 1], [], []>} : vector<2x32xf32>, vector<32x128xf32>, vector<2x128xf32> -> vector<2x128xf32>
    %33 = arith.addf %31, %32 : vector<2x128xf32>
    %34 = arith.negf %33 : vector<2x128xf32>
    %35 = math.exp %34 : vector<2x128xf32>
    %cst_18 = arith.constant 1.000000e+00 : f32
    %36 = vector.broadcast %cst_18 : f32 to vector<2x128xf32>
    %37 = arith.addf %36, %35 : vector<2x128xf32>
    %38 = arith.divf %36, %37 : vector<2x128xf32>
    %cst_19 = arith.constant 2.000000e+00 : f32
    %39 = vector.broadcast %cst_19 : f32 to vector<2x128xf32>
    %40 = arith.mulf %39, %38 : vector<2x128xf32>
    %cst_20 = arith.constant 1.000000e+00 : f32
    %41 = vector.broadcast %cst_20 : f32 to vector<2x128xf32>
    %42 = arith.subf %40, %41 : vector<2x128xf32>
    %43 = arith.select %23, %42, %38 : vector<2x128xi1>, vector<2x128xf32>
    %44 = vector.extract_strided_slice %43 {offsets = [0, 0], sizes = [2, 32], strides = [1, 1]} : vector<2x128xf32> to vector<2x32xf32>
    %45 = vector.extract_strided_slice %43 {offsets = [0, 32], sizes = [2, 32], strides = [1, 1]} : vector<2x128xf32> to vector<2x32xf32>
    %46 = vector.extract_strided_slice %43 {offsets = [0, 64], sizes = [2, 32], strides = [1, 1]} : vector<2x128xf32> to vector<2x32xf32>
    %47 = vector.extract_strided_slice %43 {offsets = [0, 96], sizes = [2, 32], strides = [1, 1]} : vector<2x128xf32> to vector<2x32xf32>
    %48 = arith.mulf %45, %25 : vector<2x32xf32>
    %49 = arith.mulf %44, %46 : vector<2x32xf32>
    %50 = arith.addf %48, %49 : vector<2x32xf32>
    %51 = math.tanh %50 : vector<2x32xf32>
    %52 = arith.mulf %47, %51 : vector<2x32xf32>
    %cst_21 = arith.constant dense<0.000000e+00> : vector<2x128xf32>
    %53 = tpu.matmul %52, %1, %cst_21 {dimension_numbers = #tpu.dot_dimension_numbers<[1], [0], [0], [1], [0, 0, 1, 1], [], []>} : vector<2x32xf32>, vector<32x128xf32>, vector<2x128xf32> -> vector<2x128xf32>
    %54 = arith.addf %29, %53 : vector<2x128xf32>
    %55 = arith.negf %54 : vector<2x128xf32>
    %56 = math.exp %55 : vector<2x128xf32>
    %cst_22 = arith.constant 1.000000e+00 : f32
    %57 = vector.broadcast %cst_22 : f32 to vector<2x128xf32>
    %58 = arith.addf %57, %56 : vector<2x128xf32>
    %59 = arith.divf %57, %58 : vector<2x128xf32>
    %cst_23 = arith.constant 2.000000e+00 : f32
    %60 = vector.broadcast %cst_23 : f32 to vector<2x128xf32>
    %61 = arith.mulf %60, %59 : vector<2x128xf32>
    %cst_24 = arith.constant 1.000000e+00 : f32
    %62 = vector.broadcast %cst_24 : f32 to vector<2x128xf32>
    %63 = arith.subf %61, %62 : vector<2x128xf32>
    %64 = arith.select %23, %63, %59 : vector<2x128xi1>, vector<2x128xf32>
    %65 = vector.extract_strided_slice %64 {offsets = [0, 0], sizes = [2, 32], strides = [1, 1]} : vector<2x128xf32> to vector<2x32xf32>
    %66 = vector.extract_strided_slice %64 {offsets = [0, 32], sizes = [2, 32], strides = [1, 1]} : vector<2x128xf32> to vector<2x32xf32>
    %67 = vector.extract_strided_slice %64 {offsets = [0, 64], sizes = [2, 32], strides = [1, 1]} : vector<2x128xf32> to vector<2x32xf32>
    %68 = vector.extract_strided_slice %64 {offsets = [0, 96], sizes = [2, 32], strides = [1, 1]} : vector<2x128xf32> to vector<2x32xf32>
    %69 = arith.mulf %66, %27 : vector<2x32xf32>
    %70 = arith.mulf %65, %67 : vector<2x32xf32>
    %71 = arith.addf %69, %70 : vector<2x32xf32>
    %72 = math.tanh %71 : vector<2x32xf32>
    %73 = arith.mulf %68, %72 : vector<2x32xf32>
    %cst_25 = arith.constant dense<0.000000e+00> : vector<2x128xf32>
    %74 = tpu.matmul %73, %2, %cst_25 {dimension_numbers = #tpu.dot_dimension_numbers<[1], [0], [0], [1], [0, 0, 1, 1], [], []>} : vector<2x32xf32>, vector<32x128xf32>, vector<2x128xf32> -> vector<2x128xf32>
    %75 = arith.addf %74, %17 : vector<2x128xf32>
    %76 = vector.extract_strided_slice %14 {offsets = [1, 0, 0], sizes = [1, 2, 128], strides = [1, 1, 1]} : vector<8x2x128xf32> to vector<1x2x128xf32>
    %77 = vector.shape_cast %76 : vector<1x2x128xf32> to vector<2x128xf32>
    %cst_26 = arith.constant dense<0.000000e+00> : vector<2x128xf32>
    %78 = tpu.matmul %52, %0, %cst_26 {dimension_numbers = #tpu.dot_dimension_numbers<[1], [0], [0], [1], [0, 0, 1, 1], [], []>} : vector<2x32xf32>, vector<32x128xf32>, vector<2x128xf32> -> vector<2x128xf32>
    %79 = arith.addf %77, %78 : vector<2x128xf32>
    %80 = arith.negf %79 : vector<2x128xf32>
    %81 = math.exp %80 : vector<2x128xf32>
    %cst_27 = arith.constant 1.000000e+00 : f32
    %82 = vector.broadcast %cst_27 : f32 to vector<2x128xf32>
    %83 = arith.addf %82, %81 : vector<2x128xf32>
    %84 = arith.divf %82, %83 : vector<2x128xf32>
    %cst_28 = arith.constant 2.000000e+00 : f32
    %85 = vector.broadcast %cst_28 : f32 to vector<2x128xf32>
    %86 = arith.mulf %85, %84 : vector<2x128xf32>
    %cst_29 = arith.constant 1.000000e+00 : f32
    %87 = vector.broadcast %cst_29 : f32 to vector<2x128xf32>
    %88 = arith.subf %86, %87 : vector<2x128xf32>
    %89 = arith.select %23, %88, %84 : vector<2x128xi1>, vector<2x128xf32>
    %90 = vector.extract_strided_slice %89 {offsets = [0, 0], sizes = [2, 32], strides = [1, 1]} : vector<2x128xf32> to vector<2x32xf32>
    %91 = vector.extract_strided_slice %89 {offsets = [0, 32], sizes = [2, 32], strides = [1, 1]} : vector<2x128xf32> to vector<2x32xf32>
    %92 = vector.extract_strided_slice %89 {offsets = [0, 64], sizes = [2, 32], strides = [1, 1]} : vector<2x128xf32> to vector<2x32xf32>
    %93 = vector.extract_strided_slice %89 {offsets = [0, 96], sizes = [2, 32], strides = [1, 1]} : vector<2x128xf32> to vector<2x32xf32>
    %94 = arith.mulf %91, %50 : vector<2x32xf32>
    %95 = arith.mulf %90, %92 : vector<2x32xf32>
    %96 = arith.addf %94, %95 : vector<2x32xf32>
    %97 = math.tanh %96 : vector<2x32xf32>
    %98 = arith.mulf %93, %97 : vector<2x32xf32>
    %cst_30 = arith.constant dense<0.000000e+00> : vector<2x128xf32>
    %99 = tpu.matmul %98, %1, %cst_30 {dimension_numbers = #tpu.dot_dimension_numbers<[1], [0], [0], [1], [0, 0, 1, 1], [], []>} : vector<2x32xf32>, vector<32x128xf32>, vector<2x128xf32> -> vector<2x128xf32>
    %100 = arith.addf %75, %99 : vector<2x128xf32>
    %101 = arith.negf %100 : vector<2x128xf32>
    %102 = math.exp %101 : vector<2x128xf32>
    %cst_31 = arith.constant 1.000000e+00 : f32
    %103 = vector.broadcast %cst_31 : f32 to vector<2x128xf32>
    %104 = arith.addf %103, %102 : vector<2x128xf32>
    %105 = arith.divf %103, %104 : vector<2x128xf32>
    %cst_32 = arith.constant 2.000000e+00 : f32
    %106 = vector.broadcast %cst_32 : f32 to vector<2x128xf32>
    %107 = arith.mulf %106, %105 : vector<2x128xf32>
    %cst_33 = arith.constant 1.000000e+00 : f32
    %108 = vector.broadcast %cst_33 : f32 to vector<2x128xf32>
    %109 = arith.subf %107, %108 : vector<2x128xf32>
    %110 = arith.select %23, %109, %105 : vector<2x128xi1>, vector<2x128xf32>
    %111 = vector.extract_strided_slice %110 {offsets = [0, 0], sizes = [2, 32], strides = [1, 1]} : vector<2x128xf32> to vector<2x32xf32>
    %112 = vector.extract_strided_slice %110 {offsets = [0, 32], sizes = [2, 32], strides = [1, 1]} : vector<2x128xf32> to vector<2x32xf32>
    %113 = vector.extract_strided_slice %110 {offsets = [0, 64], sizes = [2, 32], strides = [1, 1]} : vector<2x128xf32> to vector<2x32xf32>
    %114 = vector.extract_strided_slice %110 {offsets = [0, 96], sizes = [2, 32], strides = [1, 1]} : vector<2x128xf32> to vector<2x32xf32>
    %115 = arith.mulf %112, %71 : vector<2x32xf32>
    %116 = arith.mulf %111, %113 : vector<2x32xf32>
    %117 = arith.addf %115, %116 : vector<2x32xf32>
    %118 = math.tanh %117 : vector<2x32xf32>
    %119 = arith.mulf %114, %118 : vector<2x32xf32>
    %cst_34 = arith.constant dense<0.000000e+00> : vector<2x128xf32>
    %120 = tpu.matmul %119, %2, %cst_34 {dimension_numbers = #tpu.dot_dimension_numbers<[1], [0], [0], [1], [0, 0, 1, 1], [], []>} : vector<2x32xf32>, vector<32x128xf32>, vector<2x128xf32> -> vector<2x128xf32>
    %121 = arith.addf %120, %17 : vector<2x128xf32>
    %122 = vector.extract_strided_slice %14 {offsets = [2, 0, 0], sizes = [1, 2, 128], strides = [1, 1, 1]} : vector<8x2x128xf32> to vector<1x2x128xf32>
    %123 = vector.shape_cast %122 : vector<1x2x128xf32> to vector<2x128xf32>
    %cst_35 = arith.constant dense<0.000000e+00> : vector<2x128xf32>
    %124 = tpu.matmul %98, %0, %cst_35 {dimension_numbers = #tpu.dot_dimension_numbers<[1], [0], [0], [1], [0, 0, 1, 1], [], []>} : vector<2x32xf32>, vector<32x128xf32>, vector<2x128xf32> -> vector<2x128xf32>
    %125 = arith.addf %123, %124 : vector<2x128xf32>
    %126 = arith.negf %125 : vector<2x128xf32>
    %127 = math.exp %126 : vector<2x128xf32>
    %cst_36 = arith.constant 1.000000e+00 : f32
    %128 = vector.broadcast %cst_36 : f32 to vector<2x128xf32>
    %129 = arith.addf %128, %127 : vector<2x128xf32>
    %130 = arith.divf %128, %129 : vector<2x128xf32>
    %cst_37 = arith.constant 2.000000e+00 : f32
    %131 = vector.broadcast %cst_37 : f32 to vector<2x128xf32>
    %132 = arith.mulf %131, %130 : vector<2x128xf32>
    %cst_38 = arith.constant 1.000000e+00 : f32
    %133 = vector.broadcast %cst_38 : f32 to vector<2x128xf32>
    %134 = arith.subf %132, %133 : vector<2x128xf32>
    %135 = arith.select %23, %134, %130 : vector<2x128xi1>, vector<2x128xf32>
    %136 = vector.extract_strided_slice %135 {offsets = [0, 0], sizes = [2, 32], strides = [1, 1]} : vector<2x128xf32> to vector<2x32xf32>
    %137 = vector.extract_strided_slice %135 {offsets = [0, 32], sizes = [2, 32], strides = [1, 1]} : vector<2x128xf32> to vector<2x32xf32>
    %138 = vector.extract_strided_slice %135 {offsets = [0, 64], sizes = [2, 32], strides = [1, 1]} : vector<2x128xf32> to vector<2x32xf32>
    %139 = vector.extract_strided_slice %135 {offsets = [0, 96], sizes = [2, 32], strides = [1, 1]} : vector<2x128xf32> to vector<2x32xf32>
    %140 = arith.mulf %137, %96 : vector<2x32xf32>
    %141 = arith.mulf %136, %138 : vector<2x32xf32>
    %142 = arith.addf %140, %141 : vector<2x32xf32>
    %143 = math.tanh %142 : vector<2x32xf32>
    %144 = arith.mulf %139, %143 : vector<2x32xf32>
    %cst_39 = arith.constant dense<0.000000e+00> : vector<2x128xf32>
    %145 = tpu.matmul %144, %1, %cst_39 {dimension_numbers = #tpu.dot_dimension_numbers<[1], [0], [0], [1], [0, 0, 1, 1], [], []>} : vector<2x32xf32>, vector<32x128xf32>, vector<2x128xf32> -> vector<2x128xf32>
    %146 = arith.addf %121, %145 : vector<2x128xf32>
    %147 = arith.negf %146 : vector<2x128xf32>
    %148 = math.exp %147 : vector<2x128xf32>
    %cst_40 = arith.constant 1.000000e+00 : f32
    %149 = vector.broadcast %cst_40 : f32 to vector<2x128xf32>
    %150 = arith.addf %149, %148 : vector<2x128xf32>
    %151 = arith.divf %149, %150 : vector<2x128xf32>
    %cst_41 = arith.constant 2.000000e+00 : f32
    %152 = vector.broadcast %cst_41 : f32 to vector<2x128xf32>
    %153 = arith.mulf %152, %151 : vector<2x128xf32>
    %cst_42 = arith.constant 1.000000e+00 : f32
    %154 = vector.broadcast %cst_42 : f32 to vector<2x128xf32>
    %155 = arith.subf %153, %154 : vector<2x128xf32>
    %156 = arith.select %23, %155, %151 : vector<2x128xi1>, vector<2x128xf32>
    %157 = vector.extract_strided_slice %156 {offsets = [0, 0], sizes = [2, 32], strides = [1, 1]} : vector<2x128xf32> to vector<2x32xf32>
    %158 = vector.extract_strided_slice %156 {offsets = [0, 32], sizes = [2, 32], strides = [1, 1]} : vector<2x128xf32> to vector<2x32xf32>
    %159 = vector.extract_strided_slice %156 {offsets = [0, 64], sizes = [2, 32], strides = [1, 1]} : vector<2x128xf32> to vector<2x32xf32>
    %160 = vector.extract_strided_slice %156 {offsets = [0, 96], sizes = [2, 32], strides = [1, 1]} : vector<2x128xf32> to vector<2x32xf32>
    %161 = arith.mulf %158, %117 : vector<2x32xf32>
    %162 = arith.mulf %157, %159 : vector<2x32xf32>
    %163 = arith.addf %161, %162 : vector<2x32xf32>
    %164 = math.tanh %163 : vector<2x32xf32>
    %165 = arith.mulf %160, %164 : vector<2x32xf32>
    %cst_43 = arith.constant dense<0.000000e+00> : vector<2x128xf32>
    %166 = tpu.matmul %165, %2, %cst_43 {dimension_numbers = #tpu.dot_dimension_numbers<[1], [0], [0], [1], [0, 0, 1, 1], [], []>} : vector<2x32xf32>, vector<32x128xf32>, vector<2x128xf32> -> vector<2x128xf32>
    %167 = arith.addf %166, %17 : vector<2x128xf32>
    %168 = vector.extract_strided_slice %14 {offsets = [3, 0, 0], sizes = [1, 2, 128], strides = [1, 1, 1]} : vector<8x2x128xf32> to vector<1x2x128xf32>
    %169 = vector.shape_cast %168 : vector<1x2x128xf32> to vector<2x128xf32>
    %cst_44 = arith.constant dense<0.000000e+00> : vector<2x128xf32>
    %170 = tpu.matmul %144, %0, %cst_44 {dimension_numbers = #tpu.dot_dimension_numbers<[1], [0], [0], [1], [0, 0, 1, 1], [], []>} : vector<2x32xf32>, vector<32x128xf32>, vector<2x128xf32> -> vector<2x128xf32>
    %171 = arith.addf %169, %170 : vector<2x128xf32>
    %172 = arith.negf %171 : vector<2x128xf32>
    %173 = math.exp %172 : vector<2x128xf32>
    %cst_45 = arith.constant 1.000000e+00 : f32
    %174 = vector.broadcast %cst_45 : f32 to vector<2x128xf32>
    %175 = arith.addf %174, %173 : vector<2x128xf32>
    %176 = arith.divf %174, %175 : vector<2x128xf32>
    %cst_46 = arith.constant 2.000000e+00 : f32
    %177 = vector.broadcast %cst_46 : f32 to vector<2x128xf32>
    %178 = arith.mulf %177, %176 : vector<2x128xf32>
    %cst_47 = arith.constant 1.000000e+00 : f32
    %179 = vector.broadcast %cst_47 : f32 to vector<2x128xf32>
    %180 = arith.subf %178, %179 : vector<2x128xf32>
    %181 = arith.select %23, %180, %176 : vector<2x128xi1>, vector<2x128xf32>
    %182 = vector.extract_strided_slice %181 {offsets = [0, 0], sizes = [2, 32], strides = [1, 1]} : vector<2x128xf32> to vector<2x32xf32>
    %183 = vector.extract_strided_slice %181 {offsets = [0, 32], sizes = [2, 32], strides = [1, 1]} : vector<2x128xf32> to vector<2x32xf32>
    %184 = vector.extract_strided_slice %181 {offsets = [0, 64], sizes = [2, 32], strides = [1, 1]} : vector<2x128xf32> to vector<2x32xf32>
    %185 = vector.extract_strided_slice %181 {offsets = [0, 96], sizes = [2, 32], strides = [1, 1]} : vector<2x128xf32> to vector<2x32xf32>
    %186 = arith.mulf %183, %142 : vector<2x32xf32>
    %187 = arith.mulf %182, %184 : vector<2x32xf32>
    %188 = arith.addf %186, %187 : vector<2x32xf32>
    %189 = math.tanh %188 : vector<2x32xf32>
    %190 = arith.mulf %185, %189 : vector<2x32xf32>
    %cst_48 = arith.constant dense<0.000000e+00> : vector<2x128xf32>
    %191 = tpu.matmul %190, %1, %cst_48 {dimension_numbers = #tpu.dot_dimension_numbers<[1], [0], [0], [1], [0, 0, 1, 1], [], []>} : vector<2x32xf32>, vector<32x128xf32>, vector<2x128xf32> -> vector<2x128xf32>
    %192 = arith.addf %167, %191 : vector<2x128xf32>
    %193 = arith.negf %192 : vector<2x128xf32>
    %194 = math.exp %193 : vector<2x128xf32>
    %cst_49 = arith.constant 1.000000e+00 : f32
    %195 = vector.broadcast %cst_49 : f32 to vector<2x128xf32>
    %196 = arith.addf %195, %194 : vector<2x128xf32>
    %197 = arith.divf %195, %196 : vector<2x128xf32>
    %cst_50 = arith.constant 2.000000e+00 : f32
    %198 = vector.broadcast %cst_50 : f32 to vector<2x128xf32>
    %199 = arith.mulf %198, %197 : vector<2x128xf32>
    %cst_51 = arith.constant 1.000000e+00 : f32
    %200 = vector.broadcast %cst_51 : f32 to vector<2x128xf32>
    %201 = arith.subf %199, %200 : vector<2x128xf32>
    %202 = arith.select %23, %201, %197 : vector<2x128xi1>, vector<2x128xf32>
    %203 = vector.extract_strided_slice %202 {offsets = [0, 0], sizes = [2, 32], strides = [1, 1]} : vector<2x128xf32> to vector<2x32xf32>
    %204 = vector.extract_strided_slice %202 {offsets = [0, 32], sizes = [2, 32], strides = [1, 1]} : vector<2x128xf32> to vector<2x32xf32>
    %205 = vector.extract_strided_slice %202 {offsets = [0, 64], sizes = [2, 32], strides = [1, 1]} : vector<2x128xf32> to vector<2x32xf32>
    %206 = vector.extract_strided_slice %202 {offsets = [0, 96], sizes = [2, 32], strides = [1, 1]} : vector<2x128xf32> to vector<2x32xf32>
    %207 = arith.mulf %204, %163 : vector<2x32xf32>
    %208 = arith.mulf %203, %205 : vector<2x32xf32>
    %209 = arith.addf %207, %208 : vector<2x32xf32>
    %210 = math.tanh %209 : vector<2x32xf32>
    %211 = arith.mulf %206, %210 : vector<2x32xf32>
    %cst_52 = arith.constant dense<0.000000e+00> : vector<2x128xf32>
    %212 = tpu.matmul %211, %2, %cst_52 {dimension_numbers = #tpu.dot_dimension_numbers<[1], [0], [0], [1], [0, 0, 1, 1], [], []>} : vector<2x32xf32>, vector<32x128xf32>, vector<2x128xf32> -> vector<2x128xf32>
    %213 = arith.addf %212, %17 : vector<2x128xf32>
    %214 = vector.extract_strided_slice %14 {offsets = [4, 0, 0], sizes = [1, 2, 128], strides = [1, 1, 1]} : vector<8x2x128xf32> to vector<1x2x128xf32>
    %215 = vector.shape_cast %214 : vector<1x2x128xf32> to vector<2x128xf32>
    %cst_53 = arith.constant dense<0.000000e+00> : vector<2x128xf32>
    %216 = tpu.matmul %190, %0, %cst_53 {dimension_numbers = #tpu.dot_dimension_numbers<[1], [0], [0], [1], [0, 0, 1, 1], [], []>} : vector<2x32xf32>, vector<32x128xf32>, vector<2x128xf32> -> vector<2x128xf32>
    %217 = arith.addf %215, %216 : vector<2x128xf32>
    %218 = arith.negf %217 : vector<2x128xf32>
    %219 = math.exp %218 : vector<2x128xf32>
    %cst_54 = arith.constant 1.000000e+00 : f32
    %220 = vector.broadcast %cst_54 : f32 to vector<2x128xf32>
    %221 = arith.addf %220, %219 : vector<2x128xf32>
    %222 = arith.divf %220, %221 : vector<2x128xf32>
    %cst_55 = arith.constant 2.000000e+00 : f32
    %223 = vector.broadcast %cst_55 : f32 to vector<2x128xf32>
    %224 = arith.mulf %223, %222 : vector<2x128xf32>
    %cst_56 = arith.constant 1.000000e+00 : f32
    %225 = vector.broadcast %cst_56 : f32 to vector<2x128xf32>
    %226 = arith.subf %224, %225 : vector<2x128xf32>
    %227 = arith.select %23, %226, %222 : vector<2x128xi1>, vector<2x128xf32>
    %228 = vector.extract_strided_slice %227 {offsets = [0, 0], sizes = [2, 32], strides = [1, 1]} : vector<2x128xf32> to vector<2x32xf32>
    %229 = vector.extract_strided_slice %227 {offsets = [0, 32], sizes = [2, 32], strides = [1, 1]} : vector<2x128xf32> to vector<2x32xf32>
    %230 = vector.extract_strided_slice %227 {offsets = [0, 64], sizes = [2, 32], strides = [1, 1]} : vector<2x128xf32> to vector<2x32xf32>
    %231 = vector.extract_strided_slice %227 {offsets = [0, 96], sizes = [2, 32], strides = [1, 1]} : vector<2x128xf32> to vector<2x32xf32>
    %232 = arith.mulf %229, %188 : vector<2x32xf32>
    %233 = arith.mulf %228, %230 : vector<2x32xf32>
    %234 = arith.addf %232, %233 : vector<2x32xf32>
    %235 = math.tanh %234 : vector<2x32xf32>
    %236 = arith.mulf %231, %235 : vector<2x32xf32>
    %cst_57 = arith.constant dense<0.000000e+00> : vector<2x128xf32>
    %237 = tpu.matmul %236, %1, %cst_57 {dimension_numbers = #tpu.dot_dimension_numbers<[1], [0], [0], [1], [0, 0, 1, 1], [], []>} : vector<2x32xf32>, vector<32x128xf32>, vector<2x128xf32> -> vector<2x128xf32>
    %238 = arith.addf %213, %237 : vector<2x128xf32>
    %239 = arith.negf %238 : vector<2x128xf32>
    %240 = math.exp %239 : vector<2x128xf32>
    %cst_58 = arith.constant 1.000000e+00 : f32
    %241 = vector.broadcast %cst_58 : f32 to vector<2x128xf32>
    %242 = arith.addf %241, %240 : vector<2x128xf32>
    %243 = arith.divf %241, %242 : vector<2x128xf32>
    %cst_59 = arith.constant 2.000000e+00 : f32
    %244 = vector.broadcast %cst_59 : f32 to vector<2x128xf32>
    %245 = arith.mulf %244, %243 : vector<2x128xf32>
    %cst_60 = arith.constant 1.000000e+00 : f32
    %246 = vector.broadcast %cst_60 : f32 to vector<2x128xf32>
    %247 = arith.subf %245, %246 : vector<2x128xf32>
    %248 = arith.select %23, %247, %243 : vector<2x128xi1>, vector<2x128xf32>
    %249 = vector.extract_strided_slice %248 {offsets = [0, 0], sizes = [2, 32], strides = [1, 1]} : vector<2x128xf32> to vector<2x32xf32>
    %250 = vector.extract_strided_slice %248 {offsets = [0, 32], sizes = [2, 32], strides = [1, 1]} : vector<2x128xf32> to vector<2x32xf32>
    %251 = vector.extract_strided_slice %248 {offsets = [0, 64], sizes = [2, 32], strides = [1, 1]} : vector<2x128xf32> to vector<2x32xf32>
    %252 = vector.extract_strided_slice %248 {offsets = [0, 96], sizes = [2, 32], strides = [1, 1]} : vector<2x128xf32> to vector<2x32xf32>
    %253 = arith.mulf %250, %209 : vector<2x32xf32>
    %254 = arith.mulf %249, %251 : vector<2x32xf32>
    %255 = arith.addf %253, %254 : vector<2x32xf32>
    %256 = math.tanh %255 : vector<2x32xf32>
    %257 = arith.mulf %252, %256 : vector<2x32xf32>
    %cst_61 = arith.constant dense<0.000000e+00> : vector<2x128xf32>
    %258 = tpu.matmul %257, %2, %cst_61 {dimension_numbers = #tpu.dot_dimension_numbers<[1], [0], [0], [1], [0, 0, 1, 1], [], []>} : vector<2x32xf32>, vector<32x128xf32>, vector<2x128xf32> -> vector<2x128xf32>
    %259 = arith.addf %258, %17 : vector<2x128xf32>
    %260 = vector.extract_strided_slice %14 {offsets = [5, 0, 0], sizes = [1, 2, 128], strides = [1, 1, 1]} : vector<8x2x128xf32> to vector<1x2x128xf32>
    %261 = vector.shape_cast %260 : vector<1x2x128xf32> to vector<2x128xf32>
    %cst_62 = arith.constant dense<0.000000e+00> : vector<2x128xf32>
    %262 = tpu.matmul %236, %0, %cst_62 {dimension_numbers = #tpu.dot_dimension_numbers<[1], [0], [0], [1], [0, 0, 1, 1], [], []>} : vector<2x32xf32>, vector<32x128xf32>, vector<2x128xf32> -> vector<2x128xf32>
    %263 = arith.addf %261, %262 : vector<2x128xf32>
    %264 = arith.negf %263 : vector<2x128xf32>
    %265 = math.exp %264 : vector<2x128xf32>
    %cst_63 = arith.constant 1.000000e+00 : f32
    %266 = vector.broadcast %cst_63 : f32 to vector<2x128xf32>
    %267 = arith.addf %266, %265 : vector<2x128xf32>
    %268 = arith.divf %266, %267 : vector<2x128xf32>
    %cst_64 = arith.constant 2.000000e+00 : f32
    %269 = vector.broadcast %cst_64 : f32 to vector<2x128xf32>
    %270 = arith.mulf %269, %268 : vector<2x128xf32>
    %cst_65 = arith.constant 1.000000e+00 : f32
    %271 = vector.broadcast %cst_65 : f32 to vector<2x128xf32>
    %272 = arith.subf %270, %271 : vector<2x128xf32>
    %273 = arith.select %23, %272, %268 : vector<2x128xi1>, vector<2x128xf32>
    %274 = vector.extract_strided_slice %273 {offsets = [0, 0], sizes = [2, 32], strides = [1, 1]} : vector<2x128xf32> to vector<2x32xf32>
    %275 = vector.extract_strided_slice %273 {offsets = [0, 32], sizes = [2, 32], strides = [1, 1]} : vector<2x128xf32> to vector<2x32xf32>
    %276 = vector.extract_strided_slice %273 {offsets = [0, 64], sizes = [2, 32], strides = [1, 1]} : vector<2x128xf32> to vector<2x32xf32>
    %277 = vector.extract_strided_slice %273 {offsets = [0, 96], sizes = [2, 32], strides = [1, 1]} : vector<2x128xf32> to vector<2x32xf32>
    %278 = arith.mulf %275, %234 : vector<2x32xf32>
    %279 = arith.mulf %274, %276 : vector<2x32xf32>
    %280 = arith.addf %278, %279 : vector<2x32xf32>
    %281 = math.tanh %280 : vector<2x32xf32>
    %282 = arith.mulf %277, %281 : vector<2x32xf32>
    %cst_66 = arith.constant dense<0.000000e+00> : vector<2x128xf32>
    %283 = tpu.matmul %282, %1, %cst_66 {dimension_numbers = #tpu.dot_dimension_numbers<[1], [0], [0], [1], [0, 0, 1, 1], [], []>} : vector<2x32xf32>, vector<32x128xf32>, vector<2x128xf32> -> vector<2x128xf32>
    %284 = arith.addf %259, %283 : vector<2x128xf32>
    %285 = arith.negf %284 : vector<2x128xf32>
    %286 = math.exp %285 : vector<2x128xf32>
    %cst_67 = arith.constant 1.000000e+00 : f32
    %287 = vector.broadcast %cst_67 : f32 to vector<2x128xf32>
    %288 = arith.addf %287, %286 : vector<2x128xf32>
    %289 = arith.divf %287, %288 : vector<2x128xf32>
    %cst_68 = arith.constant 2.000000e+00 : f32
    %290 = vector.broadcast %cst_68 : f32 to vector<2x128xf32>
    %291 = arith.mulf %290, %289 : vector<2x128xf32>
    %cst_69 = arith.constant 1.000000e+00 : f32
    %292 = vector.broadcast %cst_69 : f32 to vector<2x128xf32>
    %293 = arith.subf %291, %292 : vector<2x128xf32>
    %294 = arith.select %23, %293, %289 : vector<2x128xi1>, vector<2x128xf32>
    %295 = vector.extract_strided_slice %294 {offsets = [0, 0], sizes = [2, 32], strides = [1, 1]} : vector<2x128xf32> to vector<2x32xf32>
    %296 = vector.extract_strided_slice %294 {offsets = [0, 32], sizes = [2, 32], strides = [1, 1]} : vector<2x128xf32> to vector<2x32xf32>
    %297 = vector.extract_strided_slice %294 {offsets = [0, 64], sizes = [2, 32], strides = [1, 1]} : vector<2x128xf32> to vector<2x32xf32>
    %298 = vector.extract_strided_slice %294 {offsets = [0, 96], sizes = [2, 32], strides = [1, 1]} : vector<2x128xf32> to vector<2x32xf32>
    %299 = arith.mulf %296, %255 : vector<2x32xf32>
    %300 = arith.mulf %295, %297 : vector<2x32xf32>
    %301 = arith.addf %299, %300 : vector<2x32xf32>
    %302 = math.tanh %301 : vector<2x32xf32>
    %303 = arith.mulf %298, %302 : vector<2x32xf32>
    %cst_70 = arith.constant dense<0.000000e+00> : vector<2x128xf32>
    %304 = tpu.matmul %303, %2, %cst_70 {dimension_numbers = #tpu.dot_dimension_numbers<[1], [0], [0], [1], [0, 0, 1, 1], [], []>} : vector<2x32xf32>, vector<32x128xf32>, vector<2x128xf32> -> vector<2x128xf32>
    %305 = arith.addf %304, %17 : vector<2x128xf32>
    %306 = vector.extract_strided_slice %14 {offsets = [6, 0, 0], sizes = [1, 2, 128], strides = [1, 1, 1]} : vector<8x2x128xf32> to vector<1x2x128xf32>
    %307 = vector.shape_cast %306 : vector<1x2x128xf32> to vector<2x128xf32>
    %cst_71 = arith.constant dense<0.000000e+00> : vector<2x128xf32>
    %308 = tpu.matmul %282, %0, %cst_71 {dimension_numbers = #tpu.dot_dimension_numbers<[1], [0], [0], [1], [0, 0, 1, 1], [], []>} : vector<2x32xf32>, vector<32x128xf32>, vector<2x128xf32> -> vector<2x128xf32>
    %309 = arith.addf %307, %308 : vector<2x128xf32>
    %310 = arith.negf %309 : vector<2x128xf32>
    %311 = math.exp %310 : vector<2x128xf32>
    %cst_72 = arith.constant 1.000000e+00 : f32
    %312 = vector.broadcast %cst_72 : f32 to vector<2x128xf32>
    %313 = arith.addf %312, %311 : vector<2x128xf32>
    %314 = arith.divf %312, %313 : vector<2x128xf32>
    %cst_73 = arith.constant 2.000000e+00 : f32
    %315 = vector.broadcast %cst_73 : f32 to vector<2x128xf32>
    %316 = arith.mulf %315, %314 : vector<2x128xf32>
    %cst_74 = arith.constant 1.000000e+00 : f32
    %317 = vector.broadcast %cst_74 : f32 to vector<2x128xf32>
    %318 = arith.subf %316, %317 : vector<2x128xf32>
    %319 = arith.select %23, %318, %314 : vector<2x128xi1>, vector<2x128xf32>
    %320 = vector.extract_strided_slice %319 {offsets = [0, 0], sizes = [2, 32], strides = [1, 1]} : vector<2x128xf32> to vector<2x32xf32>
    %321 = vector.extract_strided_slice %319 {offsets = [0, 32], sizes = [2, 32], strides = [1, 1]} : vector<2x128xf32> to vector<2x32xf32>
    %322 = vector.extract_strided_slice %319 {offsets = [0, 64], sizes = [2, 32], strides = [1, 1]} : vector<2x128xf32> to vector<2x32xf32>
    %323 = vector.extract_strided_slice %319 {offsets = [0, 96], sizes = [2, 32], strides = [1, 1]} : vector<2x128xf32> to vector<2x32xf32>
    %324 = arith.mulf %321, %280 : vector<2x32xf32>
    %325 = arith.mulf %320, %322 : vector<2x32xf32>
    %326 = arith.addf %324, %325 : vector<2x32xf32>
    %327 = math.tanh %326 : vector<2x32xf32>
    %328 = arith.mulf %323, %327 : vector<2x32xf32>
    %cst_75 = arith.constant dense<0.000000e+00> : vector<2x128xf32>
    %329 = tpu.matmul %328, %1, %cst_75 {dimension_numbers = #tpu.dot_dimension_numbers<[1], [0], [0], [1], [0, 0, 1, 1], [], []>} : vector<2x32xf32>, vector<32x128xf32>, vector<2x128xf32> -> vector<2x128xf32>
    %330 = arith.addf %305, %329 : vector<2x128xf32>
    %331 = arith.negf %330 : vector<2x128xf32>
    %332 = math.exp %331 : vector<2x128xf32>
    %cst_76 = arith.constant 1.000000e+00 : f32
    %333 = vector.broadcast %cst_76 : f32 to vector<2x128xf32>
    %334 = arith.addf %333, %332 : vector<2x128xf32>
    %335 = arith.divf %333, %334 : vector<2x128xf32>
    %cst_77 = arith.constant 2.000000e+00 : f32
    %336 = vector.broadcast %cst_77 : f32 to vector<2x128xf32>
    %337 = arith.mulf %336, %335 : vector<2x128xf32>
    %cst_78 = arith.constant 1.000000e+00 : f32
    %338 = vector.broadcast %cst_78 : f32 to vector<2x128xf32>
    %339 = arith.subf %337, %338 : vector<2x128xf32>
    %340 = arith.select %23, %339, %335 : vector<2x128xi1>, vector<2x128xf32>
    %341 = vector.extract_strided_slice %340 {offsets = [0, 0], sizes = [2, 32], strides = [1, 1]} : vector<2x128xf32> to vector<2x32xf32>
    %342 = vector.extract_strided_slice %340 {offsets = [0, 32], sizes = [2, 32], strides = [1, 1]} : vector<2x128xf32> to vector<2x32xf32>
    %343 = vector.extract_strided_slice %340 {offsets = [0, 64], sizes = [2, 32], strides = [1, 1]} : vector<2x128xf32> to vector<2x32xf32>
    %344 = vector.extract_strided_slice %340 {offsets = [0, 96], sizes = [2, 32], strides = [1, 1]} : vector<2x128xf32> to vector<2x32xf32>
    %345 = arith.mulf %342, %301 : vector<2x32xf32>
    %346 = arith.mulf %341, %343 : vector<2x32xf32>
    %347 = arith.addf %345, %346 : vector<2x32xf32>
    %348 = math.tanh %347 : vector<2x32xf32>
    %349 = arith.mulf %344, %348 : vector<2x32xf32>
    %cst_79 = arith.constant dense<0.000000e+00> : vector<2x128xf32>
    %350 = tpu.matmul %349, %2, %cst_79 {dimension_numbers = #tpu.dot_dimension_numbers<[1], [0], [0], [1], [0, 0, 1, 1], [], []>} : vector<2x32xf32>, vector<32x128xf32>, vector<2x128xf32> -> vector<2x128xf32>
    %351 = arith.addf %350, %17 : vector<2x128xf32>
    %352 = vector.extract_strided_slice %14 {offsets = [7, 0, 0], sizes = [1, 2, 128], strides = [1, 1, 1]} : vector<8x2x128xf32> to vector<1x2x128xf32>
    %353 = vector.shape_cast %352 : vector<1x2x128xf32> to vector<2x128xf32>
    %cst_80 = arith.constant dense<0.000000e+00> : vector<2x128xf32>
    %354 = tpu.matmul %328, %0, %cst_80 {dimension_numbers = #tpu.dot_dimension_numbers<[1], [0], [0], [1], [0, 0, 1, 1], [], []>} : vector<2x32xf32>, vector<32x128xf32>, vector<2x128xf32> -> vector<2x128xf32>
    %355 = arith.addf %353, %354 : vector<2x128xf32>
    %356 = arith.negf %355 : vector<2x128xf32>
    %357 = math.exp %356 : vector<2x128xf32>
    %cst_81 = arith.constant 1.000000e+00 : f32
    %358 = vector.broadcast %cst_81 : f32 to vector<2x128xf32>
    %359 = arith.addf %358, %357 : vector<2x128xf32>
    %360 = arith.divf %358, %359 : vector<2x128xf32>
    %cst_82 = arith.constant 2.000000e+00 : f32
    %361 = vector.broadcast %cst_82 : f32 to vector<2x128xf32>
    %362 = arith.mulf %361, %360 : vector<2x128xf32>
    %cst_83 = arith.constant 1.000000e+00 : f32
    %363 = vector.broadcast %cst_83 : f32 to vector<2x128xf32>
    %364 = arith.subf %362, %363 : vector<2x128xf32>
    %365 = arith.select %23, %364, %360 : vector<2x128xi1>, vector<2x128xf32>
    %366 = vector.extract_strided_slice %365 {offsets = [0, 0], sizes = [2, 32], strides = [1, 1]} : vector<2x128xf32> to vector<2x32xf32>
    %367 = vector.extract_strided_slice %365 {offsets = [0, 32], sizes = [2, 32], strides = [1, 1]} : vector<2x128xf32> to vector<2x32xf32>
    %368 = vector.extract_strided_slice %365 {offsets = [0, 64], sizes = [2, 32], strides = [1, 1]} : vector<2x128xf32> to vector<2x32xf32>
    %369 = vector.extract_strided_slice %365 {offsets = [0, 96], sizes = [2, 32], strides = [1, 1]} : vector<2x128xf32> to vector<2x32xf32>
    %370 = arith.mulf %367, %326 : vector<2x32xf32>
    %371 = arith.mulf %366, %368 : vector<2x32xf32>
    %372 = arith.addf %370, %371 : vector<2x32xf32>
    %373 = math.tanh %372 : vector<2x32xf32>
    %374 = arith.mulf %369, %373 : vector<2x32xf32>
    %cst_84 = arith.constant dense<0.000000e+00> : vector<2x128xf32>
    %375 = tpu.matmul %374, %1, %cst_84 {dimension_numbers = #tpu.dot_dimension_numbers<[1], [0], [0], [1], [0, 0, 1, 1], [], []>} : vector<2x32xf32>, vector<32x128xf32>, vector<2x128xf32> -> vector<2x128xf32>
    %376 = arith.addf %351, %375 : vector<2x128xf32>
    %377 = arith.negf %376 : vector<2x128xf32>
    %378 = math.exp %377 : vector<2x128xf32>
    %cst_85 = arith.constant 1.000000e+00 : f32
    %379 = vector.broadcast %cst_85 : f32 to vector<2x128xf32>
    %380 = arith.addf %379, %378 : vector<2x128xf32>
    %381 = arith.divf %379, %380 : vector<2x128xf32>
    %cst_86 = arith.constant 2.000000e+00 : f32
    %382 = vector.broadcast %cst_86 : f32 to vector<2x128xf32>
    %383 = arith.mulf %382, %381 : vector<2x128xf32>
    %cst_87 = arith.constant 1.000000e+00 : f32
    %384 = vector.broadcast %cst_87 : f32 to vector<2x128xf32>
    %385 = arith.subf %383, %384 : vector<2x128xf32>
    %386 = arith.select %23, %385, %381 : vector<2x128xi1>, vector<2x128xf32>
    %387 = vector.extract_strided_slice %386 {offsets = [0, 0], sizes = [2, 32], strides = [1, 1]} : vector<2x128xf32> to vector<2x32xf32>
    %388 = vector.extract_strided_slice %386 {offsets = [0, 32], sizes = [2, 32], strides = [1, 1]} : vector<2x128xf32> to vector<2x32xf32>
    %389 = vector.extract_strided_slice %386 {offsets = [0, 64], sizes = [2, 32], strides = [1, 1]} : vector<2x128xf32> to vector<2x32xf32>
    %390 = vector.extract_strided_slice %386 {offsets = [0, 96], sizes = [2, 32], strides = [1, 1]} : vector<2x128xf32> to vector<2x32xf32>
    %391 = arith.mulf %388, %347 : vector<2x32xf32>
    %392 = arith.mulf %387, %389 : vector<2x32xf32>
    %393 = arith.addf %391, %392 : vector<2x32xf32>
    %394 = math.tanh %393 : vector<2x32xf32>
    %395 = arith.mulf %390, %394 : vector<2x32xf32>
    %c0_88 = arith.constant 0 : index
    %c0_89 = arith.constant 0 : index
    %396 = vector.load %arg8[%c0_88, %c0_89] : memref<1x32xf32, #tpu.memory_space<vmem>>, vector<1x32xf32>
    %397 = vector.broadcast %396 : vector<1x32xf32> to vector<2x32xf32>
    %398 = arith.mulf %395, %397 : vector<2x32xf32>
    %cst_90 = arith.constant dense<0.000000e+00> : vector<2xf32>
    %399 = vector.multi_reduction <add>, %398, %cst_90 [1] : vector<2x32xf32> to vector<2xf32>
    %400 = vector.shape_cast %399 : vector<2xf32> to vector<2x1xf32>
    %c0_91 = arith.constant 0 : index
    %c0_92 = arith.constant 0 : index
    %401 = vector.load %arg9[%c0_91, %c0_92] : memref<1x1xf32, #tpu.memory_space<vmem>>, vector<1x1xf32>
    %402 = vector.broadcast %401 : vector<1x1xf32> to vector<2x1xf32>
    %403 = arith.addf %400, %402 : vector<2x1xf32>
    %c0_93 = arith.constant 0 : index
    %c0_94 = arith.constant 0 : index
    %404 = vector.load %arg10[%c0_93, %c0_94] : memref<2x1xf32, #tpu.memory_space<vmem>>, vector<2x1xf32>
    tpu.vector_store %arg10[%c0_93, %c0_94], %403 {strides = array<i32>} : memref<2x1xf32, #tpu.memory_space<vmem>>, vector<2x1xf32>,
    return
  }
  func.func @transform_0(%arg0: i32) -> (i32, i32) {
    %c0_i32 = arith.constant 0 : i32
    %c0_i32_0 = arith.constant 0 : i32
    return %arg0, %c0_i32 : i32, i32
  }
  func.func @transform_1(%arg0: i32) -> (i32, i32) {
    %c0_i32 = arith.constant 0 : i32
    %c0_i32_0 = arith.constant 0 : i32
    %c0_i32_1 = arith.constant 0 : i32
    return %c0_i32, %c0_i32_0 : i32, i32
  }
  func.func @transform_2(%arg0: i32) -> (i32, i32) {
    %c0_i32 = arith.constant 0 : i32
    %c0_i32_0 = arith.constant 0 : i32
    %c0_i32_1 = arith.constant 0 : i32
    return %c0_i32, %c0_i32_0 : i32, i32
  }
  func.func @transform_3(%arg0: i32) -> (i32, i32) {
    %c0_i32 = arith.constant 0 : i32
    %c0_i32_0 = arith.constant 0 : i32
    %c0_i32_1 = arith.constant 0 : i32
    return %c0_i32, %c0_i32_0 : i32, i32
  }
  func.func @transform_4(%arg0: i32) -> (i32, i32) {
    %c0_i32 = arith.constant 0 : i32
    %c0_i32_0 = arith.constant 0 : i32
    %c0_i32_1 = arith.constant 0 : i32
    return %c0_i32, %c0_i32_0 : i32, i32
  }
  func.func @transform_5(%arg0: i32) -> (i32, i32) {
    %c0_i32 = arith.constant 0 : i32
    %c0_i32_0 = arith.constant 0 : i32
    %c0_i32_1 = arith.constant 0 : i32
    return %c0_i32, %c0_i32_0 : i32, i32
  }
  func.func @transform_6(%arg0: i32) -> (i32, i32) {
    %c0_i32 = arith.constant 0 : i32
    %c0_i32_0 = arith.constant 0 : i32
    %c0_i32_1 = arith.constant 0 : i32
    return %c0_i32, %c0_i32_0 : i32, i32
  }
  func.func @transform_7(%arg0: i32) -> (i32, i32) {
    %c0_i32 = arith.constant 0 : i32
    %c0_i32_0 = arith.constant 0 : i32
    %c0_i32_1 = arith.constant 0 : i32
    return %c0_i32, %c0_i32_0 : i32, i32
  }
  func.func @transform_8(%arg0: i32) -> (i32, i32) {
    %c0_i32 = arith.constant 0 : i32
    %c0_i32_0 = arith.constant 0 : i32
    %c0_i32_1 = arith.constant 0 : i32
    return %c0_i32, %c0_i32_0 : i32, i32
  }
  func.func @transform_9(%arg0: i32) -> (i32, i32) {
    %c0_i32 = arith.constant 0 : i32
    %c0_i32_0 = arith.constant 0 : i32
    return %arg0, %c0_i32 : i32, i32
  }
}

</mosaic_0001>

<bundles_post_ra>
// kernel: sales_predictor.1
= control target key start
LH: loop header
LB: loop body
LE: loop exit
PB: predicated region body
PF: predicated region fallthrough
CT: control target
= control target key end

     0   :  { %v2958_v1 = vmov 0.0   ;;  %vm2959_vm0 = vmmov 0   ;;  %v79_v6 = vlaneseq  ;;  %s2960_s22 = smov 64   ;;  %s2961_s23 = smov 32   ;;  %vm177_vm4 = vcmask 261120   ;;  %s3621_s0 = inlined_call_operand.vmem [shape: f32[2,8], index: 0, kind: input, shape index: {}]   ;;  %s3622_s2 = inlined_call_operand.vmem [shape: f32[32,128], index: 2, kind: input, shape index: {}]   ;;  %s3623_s1 = inlined_call_operand.vmem [shape: f32[1,128], index: 1, kind: input, shape index: {}]   ;;  %s3624_s3 = inlined_call_operand.vmem [shape: f32[1,128], index: 3, kind: input, shape index: {}]   ;;  %s3625_s5 = inlined_call_operand.vmem [shape: f32[32,128], index: 5, kind: input, shape index: {}]   ;;  %s3626_s4 = inlined_call_operand.vmem [shape: f32[32,128], index: 4, kind: input, shape index: {}]   ;;  %s3627_s6 = inlined_call_operand.vmem [shape: f32[1,128], index: 6, kind: input, shape index: {}]   ;;  %s3628_s7 = inlined_call_operand.vmem [shape: f32[1,32], index: 7, kind: input, shape index: {}]   ;;  %s3629_s8 = inlined_call_operand.<no memory space> [shape: f32[1,1], index: 8, kind: input, shape index: {}]   ;;  %s3630_s9 = inlined_call_operand.vmem [shape: f32[2,1], index: 9, kind: output, shape index: {}]  }
   0x1   :  { %v46_v0 = vld [vmem:[%s3621_s0] sm:$0x3]  ;;  %2590 = vmatprep.subr.mxu1 %v2958_v1  ;;  %v3020_v2 = vld [vmem:[%s3622_s2 + $0x18] sm:$0xff]  ;;  %v3025_v3 = vld [vmem:[%s3622_s2 + $0x10] sm:$0xff]  ;;  %2598 = vmatprep.mubr.msk.f32.mxu1 %vm2959_vm0, %v2958_v1  ;;  %s2962_s26 = smov 96   ;;  %v14_v25 = vstv %s3629_s8  ;;  %vm2382_vm5 = vcmask 254976  }
   0x2   :  { %47 = vxpose.xlu0.b32.start.end [1/1] (short) (narrow) %v46_v0, 8  ;;  %2591 = vmatpush3.msra.mxu1 %v3020_v2  ;;  %v3034_v4 = vld [vmem:[%s3622_s2 + $0x8] sm:$0xff]  ;;  %v3044_v5 = vld [vmem:[%s3622_s2] sm:$0xff]  ;;  %v3053_v7 = vshrl.u32 %v79_v6, 7  ;;  %v173_v22 = vand.u32 127, %v79_v6  ;;  %v3085_v33 = vld [vmem:[%s3625_s5 + $0x18] sm:$0xff] }
   0x3   :  { %2592 = vmatprep.subr.mxu1 %v2958_v1  ;;  %2579 = vmatprep.subr.mxu0 %v2958_v1  ;;  %v3062_v13 = vld [vmem:[%s3623_s1] ss:$0 sm:$0xff]  ;;  %v3090_v34 = vld [vmem:[%s3625_s5 + $0x10] sm:$0xff]  ;;  %v3098_v35 = vld [vmem:[%s3625_s5 + $0x8] sm:$0xff]  ;;  %15 = vst [vmem:[#allocation2] sm:$0x1] %v14_v25 }
   0x4   :  { %2593 = vmatpush3.msra.mxu1 %v3025_v3  ;;  %2587 = vmatprep.mubr.msk.f32.mxu0 %vm2959_vm0, %v2958_v1  ;;  %v81_v8 = vsub.s32 0, %v3053_v7  ;;  %v3067_v15 = vld [vmem:[%s3624_s3] ss:$0 sm:$0xff]  ;;  %vm174_vm1 = vcmp.ge.s32.totalorder %v173_v22, 64  ;;  %vm175_vm2 = vcmp.lt.s32.totalorder %v173_v22, 96  ;;  %v3117_v38 = vld [vmem:[%s3626_s4 + $0x18] sm:$0xff] }
   0x5   :  { %2594 = vmatprep.subr.mxu1 %v2958_v1  ;;  %vm3071_vm3 = vmand %vm174_vm1, %vm175_vm2  ;;  %2580 = vmatpush3.msra.mxu0 %v3085_v33  ;;  %v3107_v36 = vld [vmem:[%s3625_s5] sm:$0xff]  ;;  %v3126_v39 = vld [vmem:[%s3626_s4 + $0x10] sm:$0xff]  ;;  %v88_v44 = vsub.s32 1, %v3053_v7  ;;  %vm2394_vm6 = vcmask 1024  }
   0x6   :  { %2595 = vmatpush3.msra.mxu1 %v3034_v4  ;;  %2581 = vmatprep.subr.mxu0 %v2958_v1  ;;  %v3135_v40 = vld [vmem:[%s3626_s4 + $0x8] sm:$0xff]  ;;  %v3144_v41 = vld [vmem:[%s3626_s4] sm:$0xff] }
   0x7   :  { %2596 = vmatprep.subr.mxu1 %v2958_v1  ;;  %2582 = vmatpush3.msra.mxu0 %v3090_v34  ;;  %v3178_v49 = vld [vmem:[%s3627_s6] ss:$0 sm:$0xff] }
   0x8   :  { %2597 = vmatpush3.msra.mxu1 %v3044_v5  ;;  %2583 = vmatprep.subr.mxu0 %v2958_v1 }
   0x9   :  { %2599 = vmatmul.mubr.f32.vlgmr.msra.gmra.mxu1 %v2958_v1  ;;  %2612 = vmatprep.subr.mxu1 %v2958_v1 }
   0xa   :  { %2620 = vmatprep.mubr.msk.f32.mxu1 %vm2959_vm0, %v2958_v1  ;;  %2613 = vmatpush3.msra.mxu1 %v3085_v33 }
   0xb   :  { %2614 = vmatprep.subr.mxu1 %v2958_v1  ;;  %2584 = vmatpush3.msra.mxu0 %v3098_v35 }
   0xc   :  { %2615 = vmatpush3.msra.mxu1 %v3090_v34  ;;  %2585 = vmatprep.subr.mxu0 %v2958_v1 }
   0xd   :  { %2616 = vmatprep.subr.mxu1 %v2958_v1  ;;  %2586 = vmatpush3.msra.mxu0 %v3107_v36 }
   0xe   :  { %2617 = vmatpush3.msra.mxu1 %v3098_v35  ;;  %2588 = vmatmul.mubr.f32.vlgmr.msra.gmra.mxu0 %v2958_v1 }
   0xf   :  { %2618 = vmatprep.subr.mxu1 %v2958_v1  ;;  %2601 = vmatprep.subr.mxu0 %v2958_v1 }
  0x10   :  { %2602 = vmatpush3.msra.mxu0 %v3117_v38  ;;  %2609 = vmatprep.mubr.msk.f32.mxu0 %vm2959_vm0, %v2958_v1 }
  0x11   :  { %2603 = vmatprep.subr.mxu0 %v2958_v1  ;;  %2619 = vmatpush3.msra.mxu1 %v3107_v36 }
  0x12   :  { %2604 = vmatpush3.msra.mxu0 %v3126_v39  ;;  %2634 = vmatprep.subr.mxu1 %v2958_v1 }
  0x13   :  { %2605 = vmatprep.subr.mxu0 %v2958_v1 }
  0x14   :  { %2606 = vmatpush3.msra.mxu0 %v3135_v40 }
  0x15   :  { %2607 = vmatprep.subr.mxu0 %v2958_v1 }
  0x16   :  { %2608 = vmatpush3.msra.mxu0 %v3144_v41 }
  0x17   :  { %2623 = vmatprep.subr.mxu0 %v2958_v1 }
  0x7e   :  { %v3056_v9 = vpop.trf.xlu0 }
  0x7f   :  { %v82_v10 = vrot.slane %v3056_v9, %v81_v8  ;;  %v89_v45 = vrot.slane %v3056_v9, %v88_v44 }
  0x81   :  { %84 = vbcast.lane.b32.xlu0 %v82_v10, 256 }
  0xc9   :  { %v317_v11 = vpop.f32.mrf.mxu1 }
  0xcb   :  { %v2600_v12 = vpop.f32.mrf.mxu1 }
  0xce   :  { %v247_v46 = vpop.f32.mrf.mxu0 }
  0xcf   :  { %v248_v50 = vadd.f32 %v3178_v49, %v247_v46 }
  0xd0   :  { %v2589_v47 = vpop.f32.mrf.mxu0 }
  0xf3   :  { %v85_v14 = vpop.permute.xlu0 %84 }
  0xf4   :  { %v142_v16 = vmul.f32 %v3062_v13, %v85_v14 }
  0xf6   :  { %v157_v17 = vadd.f32 %v3067_v15, %v142_v16 }
  0xf8   :  { %v321_v18 = vadd.f32 %v317_v11, %v157_v17 }
  0xfa   :  { %v2403_v19 = vmul.f32 -1.442695, %v321_v18 }
  0xfc   :  { %2848 = vpow2.f32 %v2403_v19 }
 0x109   :  { %v2849_v20 = vpop.eup %2848 }
 0x10a   :  { %v325_v21 = vadd.f32 1.0, %v2849_v20 }
 0x10c   :  { %2850 = vrcp.f32 %v325_v21 }
 0x119   :  { %v2851_v23 = vpop.eup %2850 }
 0x11a   :  { %v328_v24 = vmul.f32 2.0, %v2851_v23 }
 0x11c   :  { %v2404_v26 = vadd.f32 -1.0, %v328_v24 }
 0x11e   :  { %v330_v27 = vsel %vm3071_vm3, %v2404_v26, %v2851_v23 }
 0x11f   :  { %333 = vrot.lane.b32.xlu1 %v330_v27, %s2960_s22  ;;  %v331_v30 = vmul.f32 0.0, %v330_v27 }
 0x191   :  { %v334_v28 = vpop.permute.xlu1 %333 }
 0x192   :  { %v336_v29 = vmul.f32 %v334_v28, %v330_v27 }
 0x194   :  { %338 = vrot.lane.b32.xlu1 %v336_v29, %s2961_s23 }
 0x206   :  { %v339_v31 = vpop.permute.xlu1 %338 }
 0x207   :  { %v3079_v32 = vadd.f32 %v339_v31, %v331_v30 }
 0x209   :  { %2852 = vtanh.f32 %v3079_v32 }
 0x216   :  { %v2853_v37 = vpop.eup %2852 }
 0x217   :  { %344 = vrot.lane.b32.xlu1 %v2853_v37, %s2960_s22 }
 0x289   :  { %v345_v42 = vpop.permute.xlu1 %344 }
 0x28a   :  { %v347_v43 = vmul.f32 %v345_v42, %v330_v27 }
 0x28c   :  { %349 = vrot.lane.b32.xlu1 %v347_v43, %s2961_s23  ;;  %v95_v43 = vsub.s32 2, %v3053_v7 }
 0x28e   :  { %v96_v44 = vrot.slane %v3056_v9, %v95_v43 }
 0x290   :  { %91 = vbcast.lane.b32.xlu1 %v89_v45, 256 }
 0x2fe   :  { %v350_v48 = vpop.permute.xlu1 %349 }
 0x2ff   :  { %2610 = vmatmul.mubr.msk.f32.vlgmr.msra.gmra.mxu0 %vm177_vm4, %v350_v48 }
 0x300   :  { %2624 = vmatpush3.msra.mxu0 %v3020_v2  ;;  %2631 = vmatprep.mubr.msk.f32.mxu0 %vm2959_vm0, %v2958_v1 }
 0x301   :  { %2625 = vmatprep.subr.mxu0 %v2958_v1 }
 0x302   :  { %2626 = vmatpush3.msra.mxu0 %v3025_v3  ;;  %v92_v51 = vpop.permute.xlu1 %91 }
 0x303   :  { %2627 = vmatprep.subr.mxu0 %v2958_v1  ;;  %v143_v55 = vmul.f32 %v3062_v13, %v92_v51 }
 0x304   :  { %2628 = vmatpush3.msra.mxu0 %v3034_v4 }
 0x305   :  { %2629 = vmatprep.subr.mxu0 %v2958_v1  ;;  %v158_v57 = vadd.f32 %v3067_v15, %v143_v55 }
 0x306   :  { %2630 = vmatpush3.msra.mxu0 %v3044_v5 }
 0x307   :  { %2632 = vmatmul.mubr.msk.f32.vlgmr.msra.gmra.mxu0 %vm177_vm4, %v350_v48  ;;  %2645 = vmatprep.subr.mxu0 %v2958_v1 }
 0x308   :  { %2646 = vmatpush3.msra.mxu0 %v3085_v33  ;;  %2653 = vmatprep.mubr.msk.f32.mxu0 %vm2959_vm0, %v2958_v1 }
 0x309   :  { %2647 = vmatprep.subr.mxu0 %v2958_v1 }
 0x30a   :  { %2648 = vmatpush3.msra.mxu0 %v3090_v34 }
 0x30b   :  { %2649 = vmatprep.subr.mxu0 %v2958_v1 }
 0x30c   :  { %2650 = vmatpush3.msra.mxu0 %v3098_v35 }
 0x30d   :  { %2651 = vmatprep.subr.mxu0 %v2958_v1 }
 0x30e   :  { %2652 = vmatpush3.msra.mxu0 %v3107_v36 }
 0x30f   :  { %2667 = vmatprep.subr.mxu0 %v2958_v1 }
 0x3bf   :  { %v419_v52 = vpop.f32.mrf.mxu0 }
 0x3c0   :  { %v423_v53 = vadd.f32 %v419_v52, %v248_v50 }
 0x3c1   :  { %v2611_v54 = vpop.f32.mrf.mxu0 }
 0x3c2   :  { %v2406_v56 = vmul.f32 -1.442695, %v423_v53 }
 0x3c4   :  { %2854 = vpow2.f32 %v2406_v56 }
 0x3c7   :  { %v591_v58 = vpop.f32.mrf.mxu0 }
 0x3c8   :  { %v595_v59 = vadd.f32 %v591_v58, %v158_v57 }
 0x3c9   :  { %v2633_v60 = vpop.f32.mrf.mxu0 }
 0x3ca   :  { %v2410_v61 = vmul.f32 -1.442695, %v595_v59 }
 0x3cc   :  { %2856 = vpow2.f32 %v2410_v61 }
 0x3d1   :  { %v2855_v62 = vpop.eup %2854 }
 0x3d2   :  { %v427_v63 = vadd.f32 1.0, %v2855_v62 }
 0x3d4   :  { %2858 = vrcp.f32 %v427_v63 }
 0x3d9   :  { %v2857_v0 = vpop.eup %2856 }
 0x3da   :  { %v599_v6 = vadd.f32 1.0, %v2857_v0 }
 0x3dc   :  { %2860 = vrcp.f32 %v599_v6 }
 0x3e1   :  { %v2859_v8 = vpop.eup %2858 }
 0x3e2   :  { %v430_v10 = vmul.f32 2.0, %v2859_v8 }
 0x3e4   :  { %v2407_v11 = vadd.f32 -1.0, %v430_v10 }
 0x3e6   :  { %v432_v12 = vsel %vm3071_vm3, %v2407_v11, %v2859_v8 }
 0x3e7   :  { %435 = vrot.lane.b32.xlu1 %v432_v12, %s2960_s22  ;;  %v433_v23 = vmul.f32 0.0, %v432_v12 }
 0x3e9   :  { %v2861_v14 = vpop.eup %2860 }
 0x3ea   :  { %v602_v16 = vmul.f32 2.0, %v2861_v14 }
 0x3ec   :  { %v2411_v17 = vadd.f32 -1.0, %v602_v16 }
 0x3ee   :  { %v604_v18 = vsel %vm3071_vm3, %v2411_v17, %v2861_v14 }
 0x3ef   :  { %607 = vrot.lane.b32.xlu1 %v604_v18, %s2960_s22  ;;  %v605_v27 = vmul.f32 %v604_v18, %v3079_v32 }
 0x459   :  { %v436_v19 = vpop.permute.xlu1 %435 }
 0x45a   :  { %v438_v20 = vmul.f32 %v436_v19, %v432_v12 }
 0x45c   :  { %440 = vrot.lane.b32.xlu1 %v438_v20, %s2961_s23 }
 0x461   :  { %v608_v21 = vpop.permute.xlu1 %607 }
 0x462   :  { %v610_v22 = vmul.f32 %v608_v21, %v604_v18 }
 0x464   :  { %612 = vrot.lane.b32.xlu1 %v610_v22, %s2961_s23 }
 0x4ce   :  { %v441_v24 = vpop.permute.xlu1 %440 }
 0x4cf   :  { %v3191_v26 = vadd.f32 %v441_v24, %v433_v23 }
 0x4d1   :  { %2862 = vtanh.f32 %v3191_v26 }
 0x4d6   :  { %v613_v28 = vpop.permute.xlu1 %612 }
 0x4d7   :  { %v3195_v29 = vadd.f32 %v613_v28, %v605_v27 }
 0x4d9   :  { %2864 = vtanh.f32 %v3195_v29 }
 0x4de   :  { %v2863_v30 = vpop.eup %2862 }
 0x4df   :  { %446 = vrot.lane.b32.xlu1 %v2863_v30, %s2960_s22 }
 0x4e6   :  { %v2865_v31 = vpop.eup %2864 }
 0x4e7   :  { %618 = vrot.lane.b32.xlu1 %v2865_v31, %s2960_s22 }
 0x551   :  { %v447_v37 = vpop.permute.xlu1 %446 }
 0x552   :  { %v449_v42 = vmul.f32 %v447_v37, %v432_v12 }
 0x554   :  { %451 = vrot.lane.b32.xlu1 %v449_v42, %s2961_s23 }
 0x558   :  { %98 = vbcast.lane.b32.xlu1 %v96_v44, 256 }
 0x559   :  { %v619_v32 = vpop.permute.xlu1 %618 }
 0x55a   :  { %v621_v45 = vmul.f32 %v619_v32, %v604_v18  ;;  %v102_v32 = vsub.s32 3, %v3053_v7 }
 0x55c   :  { %623 = vrot.lane.b32.xlu0 %v621_v45, %s2961_s23  ;;  %v103_v45 = vrot.slane %v3056_v9, %v102_v32 }
 0x5c6   :  { %v452_v46 = vpop.permute.xlu1 %451 }
 0x5c7   :  { %2621 = vmatmul.mubr.msk.f32.vlgmr.msra.gmra.mxu1 %vm177_vm4, %v452_v46 }
 0x5c8   :  { %2635 = vmatpush3.msra.mxu1 %v3117_v38  ;;  %2642 = vmatprep.mubr.msk.f32.mxu1 %vm2959_vm0, %v2958_v1 }
 0x5c9   :  { %2636 = vmatprep.subr.mxu1 %v2958_v1 }
 0x5ca   :  { %2637 = vmatpush3.msra.mxu1 %v3126_v39  ;;  %v99_v52 = vpop.permute.xlu1 %98 }
 0x5cb   :  { %2638 = vmatprep.subr.mxu1 %v2958_v1  ;;  %v144_v56 = vmul.f32 %v3062_v13, %v99_v52 }
 0x5cc   :  { %2639 = vmatpush3.msra.mxu1 %v3135_v40 }
 0x5cd   :  { %2640 = vmatprep.subr.mxu1 %v2958_v1  ;;  %v159_v58 = vadd.f32 %v3067_v15, %v144_v56 }
 0x5ce   :  { %v624_v47 = vpop.permute.xlu0 %623  ;;  %2641 = vmatpush3.msra.mxu1 %v3144_v41 }
 0x5cf   :  { %2643 = vmatmul.mubr.msk.f32.vlgmr.msra.gmra.mxu1 %vm177_vm4, %v624_v47  ;;  %2656 = vmatprep.subr.mxu1 %v2958_v1 }
 0x5d0   :  { %2657 = vmatpush3.msra.mxu1 %v3020_v2  ;;  %2664 = vmatprep.mubr.msk.f32.mxu1 %vm2959_vm0, %v2958_v1 }
 0x5d1   :  { %2658 = vmatprep.subr.mxu1 %v2958_v1 }
 0x5d2   :  { %2659 = vmatpush3.msra.mxu1 %v3025_v3 }
 0x5d3   :  { %2660 = vmatprep.subr.mxu1 %v2958_v1 }
 0x5d4   :  { %2661 = vmatpush3.msra.mxu1 %v3034_v4 }
 0x5d5   :  { %2662 = vmatprep.subr.mxu1 %v2958_v1 }
 0x5d6   :  { %2663 = vmatpush3.msra.mxu1 %v3044_v5 }
 0x5d7   :  { %2665 = vmatmul.mubr.msk.f32.vlgmr.msra.gmra.mxu1 %vm177_vm4, %v624_v47  ;;  %2678 = vmatprep.subr.mxu1 %v2958_v1 }
 0x5d8   :  { %2679 = vmatpush3.msra.mxu1 %v3085_v33  ;;  %2686 = vmatprep.mubr.msk.f32.mxu1 %vm2959_vm0, %v2958_v1 }
 0x5d9   :  { %2680 = vmatprep.subr.mxu1 %v2958_v1 }
 0x5da   :  { %2681 = vmatpush3.msra.mxu1 %v3090_v34 }
 0x5db   :  { %2682 = vmatprep.subr.mxu1 %v2958_v1 }
 0x5dc   :  { %2683 = vmatpush3.msra.mxu1 %v3098_v35 }
 0x5dd   :  { %2684 = vmatprep.subr.mxu1 %v2958_v1 }
 0x5de   :  { %2685 = vmatpush3.msra.mxu1 %v3107_v36 }
 0x5df   :  { %2700 = vmatprep.subr.mxu1 %v2958_v1 }
 0x687   :  { %v521_v48 = vpop.f32.mrf.mxu1 }
 0x688   :  { %v522_v51 = vadd.f32 %v3178_v49, %v521_v48 }
 0x689   :  { %v2622_v50 = vpop.f32.mrf.mxu1 }
 0x68f   :  { %v693_v53 = vpop.f32.mrf.mxu1 }
 0x690   :  { %v697_v54 = vadd.f32 %v693_v53, %v522_v51 }
 0x691   :  { %v2644_v55 = vpop.f32.mrf.mxu1 }
 0x692   :  { %v2413_v57 = vmul.f32 -1.442695, %v697_v54 }
 0x694   :  { %2866 = vpow2.f32 %v2413_v57 }
 0x697   :  { %v865_v59 = vpop.f32.mrf.mxu1 }
 0x698   :  { %v869_v60 = vadd.f32 %v865_v59, %v159_v58 }
 0x699   :  { %v2666_v61 = vpop.f32.mrf.mxu1 }
 0x69a   :  { %v2417_v62 = vmul.f32 -1.442695, %v869_v60 }
 0x69c   :  { %2868 = vpow2.f32 %v2417_v62 }
 0x6a1   :  { %v2867_v63 = vpop.eup %2866 }
 0x6a2   :  { %v701_v0 = vadd.f32 1.0, %v2867_v63 }
 0x6a4   :  { %2870 = vrcp.f32 %v701_v0 }
 0x6a9   :  { %v2869_v6 = vpop.eup %2868 }
 0x6aa   :  { %v873_v8 = vadd.f32 1.0, %v2869_v6 }
 0x6ac   :  { %2872 = vrcp.f32 %v873_v8 }
 0x6b1   :  { %v2871_v10 = vpop.eup %2870 }
 0x6b2   :  { %v704_v11 = vmul.f32 2.0, %v2871_v10 }
 0x6b4   :  { %v2414_v12 = vadd.f32 -1.0, %v704_v11 }
 0x6b6   :  { %v706_v14 = vsel %vm3071_vm3, %v2414_v12, %v2871_v10 }
 0x6b7   :  { %709 = vrot.lane.b32.xlu0 %v706_v14, %s2960_s22  ;;  %v707_v24 = vmul.f32 %v706_v14, %v3191_v26 }
 0x6b9   :  { %v2873_v16 = vpop.eup %2872 }
 0x6ba   :  { %v876_v17 = vmul.f32 2.0, %v2873_v16 }
 0x6bc   :  { %v2418_v18 = vadd.f32 -1.0, %v876_v17 }
 0x6be   :  { %v878_v19 = vsel %vm3071_vm3, %v2418_v18, %v2873_v16 }
 0x6bf   :  { %881 = vrot.lane.b32.xlu1 %v878_v19, %s2960_s22  ;;  %v879_v30 = vmul.f32 %v878_v19, %v3195_v29 }
 0x729   :  { %v710_v20 = vpop.permute.xlu0 %709 }
 0x72a   :  { %v712_v21 = vmul.f32 %v710_v20, %v706_v14 }
 0x72c   :  { %714 = vrot.lane.b32.xlu0 %v712_v21, %s2961_s23 }
 0x731   :  { %v882_v22 = vpop.permute.xlu1 %881 }
 0x732   :  { %v884_v23 = vmul.f32 %v882_v22, %v878_v19 }
 0x734   :  { %886 = vrot.lane.b32.xlu1 %v884_v23, %s2961_s23 }
 0x79e   :  { %v715_v27 = vpop.permute.xlu0 %714 }
 0x79f   :  { %v3249_v28 = vadd.f32 %v715_v27, %v707_v24 }
 0x7a1   :  { %2874 = vtanh.f32 %v3249_v28 }
 0x7a6   :  { %v887_v31 = vpop.permute.xlu1 %886 }
 0x7a7   :  { %v3253_v37 = vadd.f32 %v887_v31, %v879_v30 }
 0x7a9   :  { %2876 = vtanh.f32 %v3253_v37 }
 0x7ae   :  { %v2875_v42 = vpop.eup %2874 }
 0x7af   :  { %720 = vrot.lane.b32.xlu0 %v2875_v42, %s2960_s22 }
 0x7b6   :  { %v2877_v43 = vpop.eup %2876 }
 0x7b7   :  { %892 = vrot.lane.b32.xlu1 %v2877_v43, %s2960_s22 }
 0x821   :  { %v721_v44 = vpop.permute.xlu0 %720 }
 0x822   :  { %v723_v26 = vmul.f32 %v721_v44, %v706_v14 }
 0x824   :  { %725 = vrot.lane.b32.xlu0 %v723_v26, %s2961_s23 }
 0x828   :  { %105 = vbcast.lane.b32.xlu0 %v103_v45, 256 }
 0x829   :  { %v893_v29 = vpop.permute.xlu1 %892 }
 0x82a   :  { %v895_v46 = vmul.f32 %v893_v29, %v878_v19  ;;  %v109_v29 = vsub.s32 4, %v3053_v7 }
 0x82c   :  { %897 = vrot.lane.b32.xlu1 %v895_v46, %s2961_s23  ;;  %v110_v46 = vrot.slane %v3056_v9, %v109_v29 }
 0x896   :  { %v726_v47 = vpop.permute.xlu0 %725 }
 0x897   :  { %2654 = vmatmul.mubr.msk.f32.vlgmr.msra.gmra.mxu0 %vm177_vm4, %v726_v47 }
 0x898   :  { %2668 = vmatpush3.msra.mxu0 %v3117_v38  ;;  %2675 = vmatprep.mubr.msk.f32.mxu0 %vm2959_vm0, %v2958_v1 }
 0x899   :  { %2669 = vmatprep.subr.mxu0 %v2958_v1 }
 0x89a   :  { %2670 = vmatpush3.msra.mxu0 %v3126_v39  ;;  %v106_v53 = vpop.permute.xlu0 %105 }
 0x89b   :  { %2671 = vmatprep.subr.mxu0 %v2958_v1  ;;  %v145_v57 = vmul.f32 %v3062_v13, %v106_v53 }
 0x89c   :  { %2672 = vmatpush3.msra.mxu0 %v3135_v40 }
 0x89d   :  { %2673 = vmatprep.subr.mxu0 %v2958_v1  ;;  %v160_v59 = vadd.f32 %v3067_v15, %v145_v57 }
 0x89e   :  { %2674 = vmatpush3.msra.mxu0 %v3144_v41  ;;  %v898_v48 = vpop.permute.xlu1 %897 }
 0x89f   :  { %2689 = vmatprep.subr.mxu0 %v2958_v1  ;;  %2676 = vmatmul.mubr.msk.f32.vlgmr.msra.gmra.mxu0 %vm177_vm4, %v898_v48 }
 0x8a0   :  { %2690 = vmatpush3.msra.mxu0 %v3020_v2  ;;  %2697 = vmatprep.mubr.msk.f32.mxu0 %vm2959_vm0, %v2958_v1 }
 0x8a1   :  { %2691 = vmatprep.subr.mxu0 %v2958_v1 }
 0x8a2   :  { %2692 = vmatpush3.msra.mxu0 %v3025_v3 }
 0x8a3   :  { %2693 = vmatprep.subr.mxu0 %v2958_v1 }
 0x8a4   :  { %2694 = vmatpush3.msra.mxu0 %v3034_v4 }
 0x8a5   :  { %2695 = vmatprep.subr.mxu0 %v2958_v1 }
 0x8a6   :  { %2696 = vmatpush3.msra.mxu0 %v3044_v5 }
 0x8a7   :  { %2698 = vmatmul.mubr.msk.f32.vlgmr.msra.gmra.mxu0 %vm177_vm4, %v898_v48  ;;  %2711 = vmatprep.subr.mxu0 %v2958_v1 }
 0x8a8   :  { %2712 = vmatpush3.msra.mxu0 %v3085_v33  ;;  %2719 = vmatprep.mubr.msk.f32.mxu0 %vm2959_vm0, %v2958_v1 }
 0x8a9   :  { %2713 = vmatprep.subr.mxu0 %v2958_v1 }
 0x8aa   :  { %2714 = vmatpush3.msra.mxu0 %v3090_v34 }
 0x8ab   :  { %2715 = vmatprep.subr.mxu0 %v2958_v1 }
 0x8ac   :  { %2716 = vmatpush3.msra.mxu0 %v3098_v35 }
 0x8ad   :  { %2717 = vmatprep.subr.mxu0 %v2958_v1 }
 0x8ae   :  { %2718 = vmatpush3.msra.mxu0 %v3107_v36 }
 0x8af   :  { %2733 = vmatprep.subr.mxu0 %v2958_v1 }
 0x957   :  { %v795_v50 = vpop.f32.mrf.mxu0 }
 0x958   :  { %v796_v52 = vadd.f32 %v3178_v49, %v795_v50 }
 0x959   :  { %v2655_v51 = vpop.f32.mrf.mxu0 }
 0x95f   :  { %v967_v54 = vpop.f32.mrf.mxu0 }
 0x960   :  { %v971_v55 = vadd.f32 %v967_v54, %v796_v52 }
 0x961   :  { %v2677_v56 = vpop.f32.mrf.mxu0 }
 0x962   :  { %v2420_v58 = vmul.f32 -1.442695, %v971_v55 }
 0x964   :  { %2878 = vpow2.f32 %v2420_v58 }
 0x967   :  { %v1139_v60 = vpop.f32.mrf.mxu0 }
 0x968   :  { %v1143_v61 = vadd.f32 %v1139_v60, %v160_v59 }
 0x969   :  { %v2699_v62 = vpop.f32.mrf.mxu0 }
 0x96a   :  { %v2424_v63 = vmul.f32 -1.442695, %v1143_v61 }
 0x96c   :  { %2880 = vpow2.f32 %v2424_v63 }
 0x971   :  { %v2879_v0 = vpop.eup %2878 }
 0x972   :  { %v975_v6 = vadd.f32 1.0, %v2879_v0 }
 0x974   :  { %2882 = vrcp.f32 %v975_v6 }
 0x979   :  { %v2881_v8 = vpop.eup %2880 }
 0x97a   :  { %v1147_v10 = vadd.f32 1.0, %v2881_v8 }
 0x97c   :  { %2884 = vrcp.f32 %v1147_v10 }
 0x981   :  { %v2883_v11 = vpop.eup %2882 }
 0x982   :  { %v978_v12 = vmul.f32 2.0, %v2883_v11 }
 0x984   :  { %v2421_v14 = vadd.f32 -1.0, %v978_v12 }
 0x986   :  { %v980_v16 = vsel %vm3071_vm3, %v2421_v14, %v2883_v11 }
 0x987   :  { %983 = vrot.lane.b32.xlu1 %v980_v16, %s2960_s22  ;;  %v981_v27 = vmul.f32 %v980_v16, %v3249_v28 }
 0x989   :  { %v2885_v17 = vpop.eup %2884 }
 0x98a   :  { %v1150_v18 = vmul.f32 2.0, %v2885_v17 }
 0x98c   :  { %v2425_v19 = vadd.f32 -1.0, %v1150_v18 }
 0x98e   :  { %v1152_v20 = vsel %vm3071_vm3, %v2425_v19, %v2885_v17 }
 0x98f   :  { %1155 = vrot.lane.b32.xlu0 %v1152_v20, %s2960_s22  ;;  %v1153_v42 = vmul.f32 %v1152_v20, %v3253_v37 }
 0x9f9   :  { %v984_v21 = vpop.permute.xlu1 %983 }
 0x9fa   :  { %v986_v22 = vmul.f32 %v984_v21, %v980_v16 }
 0x9fc   :  { %988 = vrot.lane.b32.xlu1 %v986_v22, %s2961_s23 }
 0xa01   :  { %v1156_v23 = vpop.permute.xlu0 %1155 }
 0xa02   :  { %v1158_v24 = vmul.f32 %v1156_v23, %v1152_v20 }
 0xa04   :  { %1160 = vrot.lane.b32.xlu0 %v1158_v24, %s2961_s23 }
 0xa6e   :  { %v989_v30 = vpop.permute.xlu1 %988 }
 0xa6f   :  { %v3307_v31 = vadd.f32 %v989_v30, %v981_v27 }
 0xa71   :  { %2886 = vtanh.f32 %v3307_v31 }
 0xa76   :  { %v1161_v43 = vpop.permute.xlu0 %1160 }
 0xa77   :  { %v3311_v44 = vadd.f32 %v1161_v43, %v1153_v42 }
 0xa79   :  { %2888 = vtanh.f32 %v3311_v44 }
 0xa7e   :  { %v2887_v26 = vpop.eup %2886 }
 0xa7f   :  { %994 = vrot.lane.b32.xlu1 %v2887_v26, %s2960_s22 }
 0xa86   :  { %v2889_v32 = vpop.eup %2888 }
 0xa87   :  { %1166 = vrot.lane.b32.xlu0 %v2889_v32, %s2960_s22 }
 0xaf1   :  { %v995_v45 = vpop.permute.xlu1 %994 }
 0xaf2   :  { %v997_v28 = vmul.f32 %v995_v45, %v980_v16 }
 0xaf4   :  { %999 = vrot.lane.b32.xlu1 %v997_v28, %s2961_s23 }
 0xaf8   :  { %112 = vbcast.lane.b32.xlu1 %v110_v46, 256 }
 0xaf9   :  { %v1167_v37 = vpop.permute.xlu0 %1166 }
 0xafa   :  { %v1169_v47 = vmul.f32 %v1167_v37, %v1152_v20  ;;  %v116_v37 = vsub.s32 5, %v3053_v7 }
 0xafc   :  { %1171 = vrot.lane.b32.xlu0 %v1169_v47, %s2961_s23  ;;  %v117_v47 = vrot.slane %v3056_v9, %v116_v37  ;;  %v2950_v37 = vld [vmem:[%s3625_s5 + $0x8] sm:$0xff] }
 0xb66   :  { %v1000_v48 = vpop.permute.xlu1 %999 }
 0xb67   :  { %2687 = vmatmul.mubr.msk.f32.vlgmr.msra.gmra.mxu1 %vm177_vm4, %v1000_v48 }
 0xb68   :  { %2701 = vmatpush3.msra.mxu1 %v3117_v38  ;;  %2708 = vmatprep.mubr.msk.f32.mxu1 %vm2959_vm0, %v2958_v1 }
 0xb69   :  { %2702 = vmatprep.subr.mxu1 %v2958_v1 }
 0xb6a   :  { %2703 = vmatpush3.msra.mxu1 %v3126_v39  ;;  %v113_v54 = vpop.permute.xlu1 %112 }
 0xb6b   :  { %2704 = vmatprep.subr.mxu1 %v2958_v1  ;;  %v146_v58 = vmul.f32 %v3062_v13, %v113_v54 }
 0xb6c   :  { %2705 = vmatpush3.msra.mxu1 %v3135_v40 }
 0xb6d   :  { %2706 = vmatprep.subr.mxu1 %v2958_v1  ;;  %v161_v60 = vadd.f32 %v3067_v15, %v146_v58 }
 0xb6e   :  { %2707 = vmatpush3.msra.mxu1 %v3144_v41  ;;  %v1172_v50 = vpop.permute.xlu0 %1171 }
 0xb6f   :  { %2709 = vmatmul.mubr.msk.f32.vlgmr.msra.gmra.mxu1 %vm177_vm4, %v1172_v50  ;;  %2722 = vmatprep.subr.mxu1 %v2958_v1 }
 0xb70   :  { %2723 = vmatpush3.msra.mxu1 %v3020_v2  ;;  %2730 = vmatprep.mubr.msk.f32.mxu1 %vm2959_vm0, %v2958_v1 }
 0xb71   :  { %2724 = vmatprep.subr.mxu1 %v2958_v1 }
 0xb72   :  { %2725 = vmatpush3.msra.mxu1 %v3025_v3 }
 0xb73   :  { %2726 = vmatprep.subr.mxu1 %v2958_v1 }
 0xb74   :  { %2727 = vmatpush3.msra.mxu1 %v3034_v4 }
 0xb75   :  { %2728 = vmatprep.subr.mxu1 %v2958_v1 }
 0xb76   :  { %2729 = vmatpush3.msra.mxu1 %v3044_v5 }
 0xb77   :  { %2731 = vmatmul.mubr.msk.f32.vlgmr.msra.gmra.mxu1 %vm177_vm4, %v1172_v50  ;;  %2744 = vmatprep.subr.mxu1 %v2958_v1 }
 0xb78   :  { %2745 = vmatpush3.msra.mxu1 %v3085_v33  ;;  %2752 = vmatprep.mubr.msk.f32.mxu1 %vm2959_vm0, %v2958_v1 }
 0xb79   :  { %2746 = vmatprep.subr.mxu1 %v2958_v1 }
 0xb7a   :  { %2747 = vmatpush3.msra.mxu1 %v3090_v34 }
 0xb7b   :  { %2748 = vmatprep.subr.mxu1 %v2958_v1 }
 0xb7c   :  { %2749 = vmatpush3.msra.mxu1 %v3098_v35 }
 0xb7d   :  { %2750 = vmatprep.subr.mxu1 %v2958_v1 }
 0xb7e   :  { %2751 = vmatpush3.msra.mxu1 %v3107_v36 }
 0xb7f   :  { %2766 = vmatprep.subr.mxu1 %v2958_v1 }
 0xc27   :  { %v1069_v51 = vpop.f32.mrf.mxu1 }
 0xc28   :  { %v1070_v53 = vadd.f32 %v3178_v49, %v1069_v51 }
 0xc29   :  { %v2688_v52 = vpop.f32.mrf.mxu1 }
 0xc2f   :  { %v1241_v55 = vpop.f32.mrf.mxu1 }
 0xc30   :  { %v1245_v56 = vadd.f32 %v1241_v55, %v1070_v53 }
 0xc31   :  { %v2710_v57 = vpop.f32.mrf.mxu1 }
 0xc32   :  { %v2427_v59 = vmul.f32 -1.442695, %v1245_v56 }
 0xc34   :  { %2890 = vpow2.f32 %v2427_v59 }
 0xc37   :  { %v1413_v61 = vpop.f32.mrf.mxu1 }
 0xc38   :  { %v1417_v62 = vadd.f32 %v1413_v61, %v161_v60 }
 0xc39   :  { %v2732_v63 = vpop.f32.mrf.mxu1 }
 0xc3a   :  { %v2431_v0 = vmul.f32 -1.442695, %v1417_v62 }
 0xc3c   :  { %2892 = vpow2.f32 %v2431_v0 }
 0xc41   :  { %v2891_v6 = vpop.eup %2890 }
 0xc42   :  { %v1249_v8 = vadd.f32 1.0, %v2891_v6 }
 0xc44   :  { %2894 = vrcp.f32 %v1249_v8 }
 0xc49   :  { %v2893_v10 = vpop.eup %2892 }
 0xc4a   :  { %v1421_v11 = vadd.f32 1.0, %v2893_v10 }
 0xc4c   :  { %2896 = vrcp.f32 %v1421_v11 }
 0xc51   :  { %v2895_v12 = vpop.eup %2894 }
 0xc52   :  { %v1252_v14 = vmul.f32 2.0, %v2895_v12 }
 0xc54   :  { %v2428_v16 = vadd.f32 -1.0, %v1252_v14 }
 0xc56   :  { %v1254_v17 = vsel %vm3071_vm3, %v2428_v16, %v2895_v12 }
 0xc57   :  { %1257 = vrot.lane.b32.xlu0 %v1254_v17, %s2960_s22  ;;  %v1255_v30 = vmul.f32 %v1254_v17, %v3307_v31 }
 0xc59   :  { %v2897_v18 = vpop.eup %2896 }
 0xc5a   :  { %v1424_v19 = vmul.f32 2.0, %v2897_v18 }
 0xc5c   :  { %v2432_v20 = vadd.f32 -1.0, %v1424_v19 }
 0xc5e   :  { %v1426_v21 = vsel %vm3071_vm3, %v2432_v20, %v2897_v18 }
 0xc5f   :  { %1429 = vrot.lane.b32.xlu1 %v1426_v21, %s2960_s22  ;;  %v1427_v26 = vmul.f32 %v1426_v21, %v3311_v44 }
 0xcc9   :  { %v1258_v22 = vpop.permute.xlu0 %1257 }
 0xcca   :  { %v1260_v23 = vmul.f32 %v1258_v22, %v1254_v17 }
 0xccc   :  { %1262 = vrot.lane.b32.xlu0 %v1260_v23, %s2961_s23 }
 0xcd1   :  { %v1430_v24 = vpop.permute.xlu1 %1429 }
 0xcd2   :  { %v1432_v27 = vmul.f32 %v1430_v24, %v1426_v21 }
 0xcd4   :  { %1434 = vrot.lane.b32.xlu1 %v1432_v27, %s2961_s23 }
 0xd3e   :  { %v1263_v42 = vpop.permute.xlu0 %1262 }
 0xd3f   :  { %v3365_v43 = vadd.f32 %v1263_v42, %v1255_v30 }
 0xd41   :  { %2898 = vtanh.f32 %v3365_v43 }
 0xd46   :  { %v1435_v32 = vpop.permute.xlu1 %1434 }
 0xd47   :  { %v3369_v45 = vadd.f32 %v1435_v32, %v1427_v26 }
 0xd49   :  { %2900 = vtanh.f32 %v3369_v45 }
 0xd4e   :  { %v2899_v28 = vpop.eup %2898 }
 0xd4f   :  { %1268 = vrot.lane.b32.xlu0 %v2899_v28, %s2960_s22 }
 0xd56   :  { %v2901_v29 = vpop.eup %2900 }
 0xd57   :  { %1440 = vrot.lane.b32.xlu1 %v2901_v29, %s2960_s22 }
 0xdc1   :  { %v1269_v46 = vpop.permute.xlu0 %1268 }
 0xdc2   :  { %v1271_v31 = vmul.f32 %v1269_v46, %v1254_v17  ;;  %v2948_v46 = vld [vmem:[%s3625_s5 + $0x18] sm:$0xff] }
 0xdc4   :  { %1273 = vrot.lane.b32.xlu0 %v1271_v31, %s2961_s23  ;;  %v2949_v31 = vld [vmem:[%s3625_s5 + $0x10] sm:$0xff] }
 0xdc8   :  { %119 = vbcast.lane.b32.xlu0 %v117_v47, 256 }
 0xdc9   :  { %v1441_v44 = vpop.permute.xlu1 %1440 }
 0xdca   :  { %v1443_v48 = vmul.f32 %v1441_v44, %v1426_v21 }
 0xdcc   :  { %1445 = vrot.lane.b32.xlu1 %v1443_v48, %s2961_s23 }
 0xe36   :  { %v1274_v50 = vpop.permute.xlu0 %1273 }
 0xe37   :  { %2720 = vmatmul.mubr.msk.f32.vlgmr.msra.gmra.mxu0 %vm177_vm4, %v1274_v50 }
 0xe38   :  { %2734 = vmatpush3.msra.mxu0 %v3117_v38  ;;  %2741 = vmatprep.mubr.msk.f32.mxu0 %vm2959_vm0, %v2958_v1 }
 0xe39   :  { %2735 = vmatprep.subr.mxu0 %v2958_v1 }
 0xe3a   :  { %2736 = vmatpush3.msra.mxu0 %v3126_v39 }
 0xe3b   :  { %2737 = vmatprep.subr.mxu0 %v2958_v1 }
 0xe3c   :  { %2738 = vmatpush3.msra.mxu0 %v3135_v40 }
 0xe3d   :  { %2739 = vmatprep.subr.mxu0 %v2958_v1 }
 0xe3e   :  { %2740 = vmatpush3.msra.mxu0 %v3144_v41  ;;  %v1446_v51 = vpop.permute.xlu1 %1445 }
 0xe3f   :  { %2755 = vmatprep.subr.mxu0 %v2958_v1  ;;  %2742 = vmatmul.mubr.msk.f32.vlgmr.msra.gmra.mxu0 %vm177_vm4, %v1446_v51 }
 0xe40   :  { %2756 = vmatpush3.msra.mxu0 %v3020_v2  ;;  %2763 = vmatprep.mubr.msk.f32.mxu0 %vm2959_vm0, %v2958_v1 }
 0xe41   :  { %2757 = vmatprep.subr.mxu0 %v2958_v1 }
 0xe42   :  { %2758 = vmatpush3.msra.mxu0 %v3025_v3 }
 0xe43   :  { %2759 = vmatprep.subr.mxu0 %v2958_v1 }
 0xe44   :  { %2760 = vmatpush3.msra.mxu0 %v3034_v4 }
 0xe45   :  { %2761 = vmatprep.subr.mxu0 %v2958_v1 }
 0xe46   :  { %2762 = vmatpush3.msra.mxu0 %v3044_v5  ;;  %v120_v5 = vpop.permute.xlu0 %119 }
 0xe47   :  { %2764 = vmatmul.mubr.msk.f32.vlgmr.msra.gmra.mxu0 %vm177_vm4, %v1446_v51  ;;  %2777 = vmatprep.subr.mxu0 %v2958_v1 }
 0xe48   :  { %2778 = vmatpush3.msra.mxu0 %v3085_v33  ;;  %2785 = vmatprep.mubr.msk.f32.mxu0 %vm2959_vm0, %v2958_v1 }
 0xe49   :  { %2779 = vmatprep.subr.mxu0 %v2958_v1 }
 0xe4a   :  { %2780 = vmatpush3.msra.mxu0 %v3090_v34  ;;  %v147_v34 = vmul.f32 %v3062_v13, %v120_v5 }
 0xe4b   :  { %2781 = vmatprep.subr.mxu0 %v2958_v1 }
 0xe4c   :  { %2782 = vmatpush3.msra.mxu0 %v3098_v35  ;;  %v162_v35 = vadd.f32 %v3067_v15, %v147_v34 }
 0xe4d   :  { %2783 = vmatprep.subr.mxu0 %v2958_v1 }
 0xe4e   :  { %2784 = vmatpush3.msra.mxu0 %v3107_v36 }
 0xe4f   :  { %2799 = vmatprep.subr.mxu0 %v2958_v1 }
 0xef7   :  { %v1343_v2 = vpop.f32.mrf.mxu0 }
 0xef8   :  { %v1344_v4 = vadd.f32 %v3178_v49, %v1343_v2 }
 0xef9   :  { %v2721_v3 = vpop.f32.mrf.mxu0 }
 0xeff   :  { %v1515_v33 = vpop.f32.mrf.mxu0 }
 0xf00   :  { %v1519_v52 = vadd.f32 %v1515_v33, %v1344_v4  ;;  %v3499_v4 = vld [vmem:[%s3623_s1] ss:$0 sm:$0xff] }
 0xf01   :  { %v2743_v53 = vpop.f32.mrf.mxu0 }
 0xf02   :  { %v2434_v54 = vmul.f32 -1.442695, %v1519_v52 }
 0xf04   :  { %2902 = vpow2.f32 %v2434_v54 }
 0xf07   :  { %v1687_v55 = vpop.f32.mrf.mxu0 }
 0xf08   :  { %v1691_v56 = vadd.f32 %v1687_v55, %v162_v35 }
 0xf09   :  { %v2765_v57 = vpop.f32.mrf.mxu0 }
 0xf0a   :  { %v2438_v58 = vmul.f32 -1.442695, %v1691_v56 }
 0xf0c   :  { %2904 = vpow2.f32 %v2438_v58 }
 0xf11   :  { %v2903_v59 = vpop.eup %2902 }
 0xf12   :  { %v1523_v60 = vadd.f32 1.0, %v2903_v59 }
 0xf14   :  { %2906 = vrcp.f32 %v1523_v60 }
 0xf19   :  { %v2905_v61 = vpop.eup %2904 }
 0xf1a   :  { %v1695_v62 = vadd.f32 1.0, %v2905_v61 }
 0xf1c   :  { %2908 = vrcp.f32 %v1695_v62 }
 0xf21   :  { %v2907_v63 = vpop.eup %2906 }
 0xf22   :  { %v1526_v0 = vmul.f32 2.0, %v2907_v63 }
 0xf24   :  { %v2435_v6 = vadd.f32 -1.0, %v1526_v0 }
 0xf26   :  { %v1528_v13 = vsel %vm3071_vm3, %v2435_v6, %v2907_v63 }
 0xf27   :  { %1531 = vrot.lane.b32.xlu1 %v1528_v13, %s2960_s22  ;;  %v1529_v18 = vmul.f32 %v1528_v13, %v3365_v43  ;;  %v123_v43 = vsub.s32 6, %v3053_v7 }
 0xf29   :  { %v2909_v15 = vpop.eup %2908  ;;  %v124_v26 = vrot.slane %v3056_v9, %v123_v43  ;;  %v3534_v43 = vld [vmem:[%s3626_s4 + $0x18] sm:$0xff] }
 0xf2a   :  { %v1698_v8 = vmul.f32 2.0, %v2909_v15 }
 0xf2c   :  { %v2439_v10 = vadd.f32 -1.0, %v1698_v8 }
 0xf2e   :  { %v1700_v11 = vsel %vm3071_vm3, %v2439_v10, %v2909_v15 }
 0xf2f   :  { %1703 = vrot.lane.b32.xlu0 %v1700_v11, %s2960_s22  ;;  %v1701_v21 = vmul.f32 %v1700_v11, %v3369_v45 }
 0xf99   :  { %v1532_v12 = vpop.permute.xlu1 %1531 }
 0xf9a   :  { %v1534_v14 = vmul.f32 %v1532_v12, %v1528_v13 }
 0xf9c   :  { %1536 = vrot.lane.b32.xlu1 %v1534_v14, %s2961_s23 }
 0xfa1   :  { %v1704_v16 = vpop.permute.xlu0 %1703 }
 0xfa2   :  { %v1706_v17 = vmul.f32 %v1704_v16, %v1700_v11 }
 0xfa4   :  { %1708 = vrot.lane.b32.xlu0 %v1706_v17, %s2961_s23 }
0x100e   :  { %v1537_v19 = vpop.permute.xlu1 %1536 }
0x100f   :  { %v3423_v20 = vadd.f32 %v1537_v19, %v1529_v18 }
0x1011   :  { %2910 = vtanh.f32 %v3423_v20 }
0x1016   :  { %v1709_v22 = vpop.permute.xlu0 %1708 }
0x1017   :  { %v3427_v23 = vadd.f32 %v1709_v22, %v1701_v21 }
0x1019   :  { %2912 = vtanh.f32 %v3427_v23 }
0x101e   :  { %v2911_v24 = vpop.eup %2910 }
0x101f   :  { %1542 = vrot.lane.b32.xlu1 %v2911_v24, %s2960_s22  ;;  %v130_v24 = vsub.s32 7, %v3053_v7  ;;  %v3543_v7 = vld [vmem:[%s3626_s4 + $0x10] sm:$0xff] }
0x1026   :  { %v2913_v27 = vpop.eup %2912 }
0x1027   :  { %1714 = vrot.lane.b32.xlu0 %v2913_v27, %s2960_s22  ;;  %v131_v27 = vrot.slane %v3056_v9, %v130_v24  ;;  %v3550_v9 = vld [vmem:[%s3626_s4 + $0x8] sm:$0xff] }
0x1091   :  { %v1543_v30 = vpop.permute.xlu1 %1542 }
0x1092   :  { %v1545_v42 = vmul.f32 %v1543_v30, %v1528_v13 }
0x1094   :  { %1547 = vrot.lane.b32.xlu1 %v1545_v42, %s2961_s23 }
0x1098   :  { %126 = vbcast.lane.b32.xlu1 %v124_v26, 256  ;;  %v3557_v26 = vld [vmem:[%s3626_s4] sm:$0xff] }
0x1099   :  { %v1715_v32 = vpop.permute.xlu0 %1714 }
0x109a   :  { %v1717_v45 = vmul.f32 %v1715_v32, %v1700_v11 }
0x109c   :  { %1719 = vrot.lane.b32.xlu0 %v1717_v45, %s2961_s23 }
0x1106   :  { %v1548_v28 = vpop.permute.xlu1 %1547 }
0x1107   :  { %2753 = vmatmul.mubr.msk.f32.vlgmr.msra.gmra.mxu1 %vm177_vm4, %v1548_v28 }
0x1108   :  { %2767 = vmatpush3.msra.mxu1 %v3117_v38  ;;  %2774 = vmatprep.mubr.msk.f32.mxu1 %vm2959_vm0, %v2958_v1  ;;  %v3451_v38 = vld [vmem:[%s3622_s2 + $0x18] sm:$0xff] }
0x1109   :  { %2768 = vmatprep.subr.mxu1 %v2958_v1 }
0x110a   :  { %2769 = vmatpush3.msra.mxu1 %v3126_v39  ;;  %v3460_v39 = vld [vmem:[%s3622_s2 + $0x10] sm:$0xff]  ;;  %v127_v50 = vpop.permute.xlu1 %126 }
0x110b   :  { %2770 = vmatprep.subr.mxu1 %v2958_v1  ;;  %v148_v5 = vmul.f32 %v3499_v4, %v127_v50 }
0x110c   :  { %2771 = vmatpush3.msra.mxu1 %v3135_v40  ;;  %v3467_v40 = vld [vmem:[%s3622_s2 + $0x8] sm:$0xff] }
0x110d   :  { %2772 = vmatprep.subr.mxu1 %v2958_v1 }
0x110e   :  { %2773 = vmatpush3.msra.mxu1 %v3144_v41  ;;  %v1720_v29 = vpop.permute.xlu0 %1719  ;;  %v3474_v41 = vld [vmem:[%s3622_s2] sm:$0xff] }
0x110f   :  { %2775 = vmatmul.mubr.msk.f32.vlgmr.msra.gmra.mxu1 %vm177_vm4, %v1720_v29  ;;  %2788 = vmatprep.subr.mxu1 %v2958_v1 }
0x1110   :  { %2789 = vmatpush3.msra.mxu1 %v3451_v38  ;;  %2796 = vmatprep.mubr.msk.f32.mxu1 %vm2959_vm0, %v2958_v1 }
0x1111   :  { %2790 = vmatprep.subr.mxu1 %v2958_v1 }
0x1112   :  { %2791 = vmatpush3.msra.mxu1 %v3460_v39 }
0x1113   :  { %2792 = vmatprep.subr.mxu1 %v2958_v1 }
0x1114   :  { %2793 = vmatpush3.msra.mxu1 %v3467_v40 }
0x1115   :  { %2794 = vmatprep.subr.mxu1 %v2958_v1 }
0x1116   :  { %2795 = vmatpush3.msra.mxu1 %v3474_v41 }
0x1117   :  { %2797 = vmatmul.mubr.msk.f32.vlgmr.msra.gmra.mxu1 %vm177_vm4, %v1720_v29  ;;  %2810 = vmatprep.subr.mxu1 %v2958_v1  ;;  %v3575_v29 = vld [vmem:[%s3627_s6] ss:$0 sm:$0xff] }
0x1118   :  { %2811 = vmatpush3.msra.mxu1 %v2948_v46  ;;  %2818 = vmatprep.mubr.msk.f32.mxu1 %vm2959_vm0, %v2958_v1 }
0x1119   :  { %2812 = vmatprep.subr.mxu1 %v2958_v1 }
0x111a   :  { %2813 = vmatpush3.msra.mxu1 %v2949_v31 }
0x111b   :  { %2814 = vmatprep.subr.mxu1 %v2958_v1 }
0x111c   :  { %2815 = vmatpush3.msra.mxu1 %v2950_v37 }
0x111d   :  { %2816 = vmatprep.subr.mxu1 %v2958_v1 }
0x111e   :  { %2817 = vmatpush3.msra.mxu1 %v3107_v36  ;;  %v3505_v36 = vld [vmem:[%s3624_s3] ss:$0 sm:$0xff] }
0x111f   :  { %2832 = vmatprep.subr.mxu1 %v2958_v1 }
0x11c7   :  { %v1617_v47 = vpop.f32.mrf.mxu1 }
0x11c8   :  { %v1618_v48 = vadd.f32 %v3178_v49, %v1617_v47  ;;  %v163_v49 = vadd.f32 %v3505_v36, %v148_v5 }
0x11c9   :  { %v2754_v44 = vpop.f32.mrf.mxu1 }
0x11cf   :  { %v1789_v51 = vpop.f32.mrf.mxu1 }
0x11d0   :  { %v1793_v2 = vadd.f32 %v1789_v51, %v1618_v48 }
0x11d1   :  { %v2776_v3 = vpop.f32.mrf.mxu1 }
0x11d2   :  { %v2441_v33 = vmul.f32 -1.442695, %v1793_v2 }
0x11d4   :  { %2914 = vpow2.f32 %v2441_v33 }
0x11d7   :  { %v1961_v52 = vpop.f32.mrf.mxu1 }
0x11d8   :  { %v1965_v53 = vadd.f32 %v1961_v52, %v163_v49 }
0x11d9   :  { %v2798_v34 = vpop.f32.mrf.mxu1 }
0x11da   :  { %v2445_v54 = vmul.f32 -1.442695, %v1965_v53 }
0x11dc   :  { %2916 = vpow2.f32 %v2445_v54 }
0x11e1   :  { %v2915_v35 = vpop.eup %2914 }
0x11e2   :  { %v1797_v55 = vadd.f32 1.0, %v2915_v35 }
0x11e4   :  { %2918 = vrcp.f32 %v1797_v55 }
0x11e9   :  { %v2917_v56 = vpop.eup %2916 }
0x11ea   :  { %v1969_v57 = vadd.f32 1.0, %v2917_v56 }
0x11ec   :  { %2920 = vrcp.f32 %v1969_v57 }
0x11f1   :  { %v2919_v58 = vpop.eup %2918 }
0x11f2   :  { %v1800_v59 = vmul.f32 2.0, %v2919_v58 }
0x11f4   :  { %v2442_v60 = vadd.f32 -1.0, %v1800_v59 }
0x11f6   :  { %v1802_v61 = vsel %vm3071_vm3, %v2442_v60, %v2919_v58 }
0x11f7   :  { %1805 = vrot.lane.b32.xlu0 %v1802_v61, %s2960_s22  ;;  %v1803_v11 = vmul.f32 %v1802_v61, %v3423_v20 }
0x11f9   :  { %v2921_v62 = vpop.eup %2920 }
0x11fa   :  { %v1972_v63 = vmul.f32 2.0, %v2921_v62 }
0x11fc   :  { %v2446_v0 = vadd.f32 -1.0, %v1972_v63 }
0x11fe   :  { %v1974_v6 = vsel %vm3071_vm3, %v2446_v0, %v2921_v62 }
0x11ff   :  { %1977 = vrot.lane.b32.xlu1 %v1974_v6, %s2960_s22  ;;  %v1975_v16 = vmul.f32 %v1974_v6, %v3427_v23 }
0x1269   :  { %v1806_v13 = vpop.permute.xlu0 %1805 }
0x126a   :  { %v1808_v15 = vmul.f32 %v1806_v13, %v1802_v61 }
0x126c   :  { %1810 = vrot.lane.b32.xlu0 %v1808_v15, %s2961_s23 }
0x1271   :  { %v1978_v8 = vpop.permute.xlu1 %1977 }
0x1272   :  { %v1980_v10 = vmul.f32 %v1978_v8, %v1974_v6 }
0x1274   :  { %1982 = vrot.lane.b32.xlu1 %v1980_v10, %s2961_s23 }
0x12de   :  { %v1811_v12 = vpop.permute.xlu0 %1810 }
0x12df   :  { %v3517_v14 = vadd.f32 %v1811_v12, %v1803_v11 }
0x12e1   :  { %2922 = vtanh.f32 %v3517_v14 }
0x12e6   :  { %v1983_v17 = vpop.permute.xlu1 %1982 }
0x12e7   :  { %v3521_v18 = vadd.f32 %v1983_v17, %v1975_v16 }
0x12e9   :  { %2924 = vtanh.f32 %v3521_v18 }
0x12ee   :  { %v2923_v19 = vpop.eup %2922 }
0x12ef   :  { %1816 = vrot.lane.b32.xlu0 %v2923_v19, %s2960_s22 }
0x12f6   :  { %v2925_v21 = vpop.eup %2924 }
0x12f7   :  { %1988 = vrot.lane.b32.xlu1 %v2925_v21, %s2960_s22 }
0x1361   :  { %v1817_v22 = vpop.permute.xlu0 %1816 }
0x1362   :  { %v1819_v20 = vmul.f32 %v1817_v22, %v1802_v61 }
0x1364   :  { %1821 = vrot.lane.b32.xlu0 %v1819_v20, %s2961_s23 }
0x1368   :  { %133 = vbcast.lane.b32.xlu0 %v131_v27, 256 }
0x1369   :  { %v1989_v23 = vpop.permute.xlu1 %1988 }
0x136a   :  { %v1991_v30 = vmul.f32 %v1989_v23, %v1974_v6 }
0x136c   :  { %1993 = vrot.lane.b32.xlu1 %v1991_v30, %s2961_s23 }
0x13d6   :  { %v1822_v42 = vpop.permute.xlu0 %1821 }
0x13d7   :  { %2786 = vmatmul.mubr.msk.f32.vlgmr.msra.gmra.mxu0 %vm177_vm4, %v1822_v42 }
0x13d8   :  { %2800 = vmatpush3.msra.mxu0 %v3534_v43  ;;  %2807 = vmatprep.mubr.msk.f32.mxu0 %vm2959_vm0, %v2958_v1 }
0x13d9   :  { %2801 = vmatprep.subr.mxu0 %v2958_v1 }
0x13da   :  { %2802 = vmatpush3.msra.mxu0 %v3543_v7 }
0x13db   :  { %2803 = vmatprep.subr.mxu0 %v2958_v1 }
0x13dc   :  { %2804 = vmatpush3.msra.mxu0 %v3550_v9 }
0x13dd   :  { %2805 = vmatprep.subr.mxu0 %v2958_v1 }
0x13de   :  { %2806 = vmatpush3.msra.mxu0 %v3557_v26  ;;  %v1994_v32 = vpop.permute.xlu1 %1993 }
0x13df   :  { %2821 = vmatprep.subr.mxu0 %v2958_v1  ;;  %2808 = vmatmul.mubr.msk.f32.vlgmr.msra.gmra.mxu0 %vm177_vm4, %v1994_v32 }
0x13e0   :  { %2822 = vmatpush3.msra.mxu0 %v3451_v38  ;;  %2829 = vmatprep.mubr.msk.f32.mxu0 %vm2959_vm0, %v2958_v1 }
0x13e1   :  { %2823 = vmatprep.subr.mxu0 %v2958_v1 }
0x13e2   :  { %2824 = vmatpush3.msra.mxu0 %v3460_v39  ;;  %v134_v39 = vpop.permute.xlu0 %133 }
0x13e3   :  { %2825 = vmatprep.subr.mxu0 %v2958_v1 }
0x13e4   :  { %2826 = vmatpush3.msra.mxu0 %v3467_v40  ;;  %v149_v40 = vmul.f32 %v3499_v4, %v134_v39 }
0x13e5   :  { %2827 = vmatprep.subr.mxu0 %v2958_v1 }
0x13e6   :  { %2828 = vmatpush3.msra.mxu0 %v3474_v41  ;;  %v164_v41 = vadd.f32 %v3505_v36, %v149_v40  ;;  %v2458_v40 = vld [vmem:[#allocation2] ss:$0 sm:$0xff] }
0x13e7   :  { %2830 = vmatmul.mubr.msk.f32.vlgmr.msra.gmra.mxu0 %vm177_vm4, %v1994_v32 }
0x1497   :  { %v1891_v45 = vpop.f32.mrf.mxu0 }
0x1498   :  { %v1892_v38 = vadd.f32 %v3575_v29, %v1891_v45 }
0x1499   :  { %v2787_v28 = vpop.f32.mrf.mxu0 }
0x149f   :  { %v2063_v46 = vpop.f32.mrf.mxu0 }
0x14a0   :  { %v2067_v31 = vadd.f32 %v2063_v46, %v1892_v38 }
0x14a1   :  { %v2809_v37 = vpop.f32.mrf.mxu0 }
0x14a2   :  { %v2448_v47 = vmul.f32 -1.442695, %v2067_v31 }
0x14a4   :  { %2926 = vpow2.f32 %v2448_v47 }
0x14a7   :  { %v2235_v44 = vpop.f32.mrf.mxu0 }
0x14a8   :  { %v2239_v48 = vadd.f32 %v2235_v44, %v164_v41 }
0x14a9   :  { %v2831_v50 = vpop.f32.mrf.mxu0 }
0x14aa   :  { %v2452_v51 = vmul.f32 -1.442695, %v2239_v48 }
0x14ac   :  { %2928 = vpow2.f32 %v2452_v51 }
0x14b1   :  { %v2927_v2 = vpop.eup %2926 }
0x14b2   :  { %v2071_v3 = vadd.f32 1.0, %v2927_v2 }
0x14b4   :  { %2930 = vrcp.f32 %v2071_v3 }
0x14b9   :  { %v2929_v5 = vpop.eup %2928 }
0x14ba   :  { %v2243_v33 = vadd.f32 1.0, %v2929_v5 }
0x14bc   :  { %2932 = vrcp.f32 %v2243_v33 }
0x14c1   :  { %v2931_v49 = vpop.eup %2930 }
0x14c2   :  { %v2074_v52 = vmul.f32 2.0, %v2931_v49 }
0x14c4   :  { %v2449_v53 = vadd.f32 -1.0, %v2074_v52 }
0x14c6   :  { %v2076_v4 = vsel %vm3071_vm3, %v2449_v53, %v2931_v49 }
0x14c7   :  { %2079 = vrot.lane.b32.xlu1 %v2076_v4, %s2960_s22  ;;  %v2077_v59 = vmul.f32 %v2076_v4, %v3517_v14 }
0x14c9   :  { %v2933_v36 = vpop.eup %2932 }
0x14ca   :  { %v2246_v34 = vmul.f32 2.0, %v2933_v36 }
0x14cc   :  { %v2453_v54 = vadd.f32 -1.0, %v2246_v34 }
0x14ce   :  { %v2248_v35 = vsel %vm3071_vm3, %v2453_v54, %v2933_v36 }
0x14cf   :  { %2251 = vrot.lane.b32.xlu0 %v2248_v35, %s2960_s22  ;;  %v2249_v62 = vmul.f32 %v2248_v35, %v3521_v18 }
0x1539   :  { %v2080_v55 = vpop.permute.xlu1 %2079 }
0x153a   :  { %v2082_v56 = vmul.f32 %v2080_v55, %v2076_v4 }
0x153c   :  { %2084 = vrot.lane.b32.xlu1 %v2082_v56, %s2961_s23 }
0x1541   :  { %v2252_v57 = vpop.permute.xlu0 %2251 }
0x1542   :  { %v2254_v58 = vmul.f32 %v2252_v57, %v2248_v35 }
0x1544   :  { %2256 = vrot.lane.b32.xlu0 %v2254_v58, %s2961_s23 }
0x15ae   :  { %v2085_v60 = vpop.permute.xlu1 %2084 }
0x15af   :  { %v2087_v61 = vadd.f32 %v2085_v60, %v2077_v59 }
0x15b1   :  { %2934 = vtanh.f32 %v2087_v61 }
0x15b6   :  { %v2257_v63 = vpop.permute.xlu0 %2256 }
0x15b7   :  { %v2259_v0 = vadd.f32 %v2257_v63, %v2249_v62 }
0x15b9   :  { %2936 = vtanh.f32 %v2259_v0 }
0x15be   :  { %v2935_v6 = vpop.eup %2934 }
0x15bf   :  { %2090 = vrot.lane.b32.xlu1 %v2935_v6, %s2960_s22 }
0x15c6   :  { %v2937_v13 = vpop.eup %2936 }
0x15c7   :  { %2262 = vrot.lane.b32.xlu0 %v2937_v13, %s2960_s22 }
0x1631   :  { %v2091_v15 = vpop.permute.xlu1 %2090 }
0x1632   :  { %v2093_v8 = vmul.f32 %v2091_v15, %v2076_v4 }
0x1634   :  { %2095 = vrot.lane.b32.xlu1 %v2093_v8, %s2961_s23 }
0x1639   :  { %v2263_v10 = vpop.permute.xlu0 %2262 }
0x163a   :  { %v2265_v11 = vmul.f32 %v2263_v10, %v2248_v35 }
0x163c   :  { %2267 = vrot.lane.b32.xlu0 %v2265_v11, %s2961_s23 }
0x16a6   :  { %v2096_v12 = vpop.permute.xlu1 %2095 }
0x16a7   :  { %2819 = vmatmul.mubr.msk.f32.vlgmr.msra.gmra.mxu1 %vm177_vm4, %v2096_v12 }
0x16a8   :  { %2833 = vmatpush3.msra.mxu1 %v3534_v43  ;;  %2840 = vmatprep.mubr.msk.f32.mxu1 %vm2959_vm0, %v2958_v1 }
0x16a9   :  { %2834 = vmatprep.subr.mxu1 %v2958_v1 }
0x16aa   :  { %2835 = vmatpush3.msra.mxu1 %v3543_v7 }
0x16ab   :  { %2836 = vmatprep.subr.mxu1 %v2958_v1 }
0x16ac   :  { %2837 = vmatpush3.msra.mxu1 %v3550_v9  ;;  %v2457_v9 = vld [vmem:[%s3628_s7] ss:$0 sm:$0xff] }
0x16ad   :  { %2838 = vmatprep.subr.mxu1 %v2958_v1 }
0x16ae   :  { %2839 = vmatpush3.msra.mxu1 %v3557_v26  ;;  %v2268_v14 = vpop.permute.xlu0 %2267 }
0x16af   :  { %2841 = vmatmul.mubr.msk.f32.vlgmr.msra.gmra.mxu1 %vm177_vm4, %v2268_v14 }
0x1767   :  { %v2165_v16 = vpop.f32.mrf.mxu1 }
0x1768   :  { %v2166_v18 = vadd.f32 %v3575_v29, %v2165_v16 }
0x1769   :  { %v2820_v17 = vpop.f32.mrf.mxu1 }
0x176f   :  { %v2337_v19 = vpop.f32.mrf.mxu1 }
0x1770   :  { %v2341_v21 = vadd.f32 %v2337_v19, %v2166_v18 }
0x1771   :  { %v2842_v22 = vpop.f32.mrf.mxu1 }
0x1772   :  { %v2455_v20 = vmul.f32 -1.442695, %v2341_v21 }
0x1774   :  { %2938 = vpow2.f32 %v2455_v20 }
0x1781   :  { %v2939_v24 = vpop.eup %2938 }
0x1782   :  { %v2345_v27 = vadd.f32 1.0, %v2939_v24 }
0x1784   :  { %2940 = vrcp.f32 %v2345_v27 }
0x1791   :  { %v2941_v23 = vpop.eup %2940 }
0x1792   :  { %v2348_v30 = vmul.f32 2.0, %v2941_v23 }
0x1794   :  { %v2456_v1 = vadd.f32 -1.0, %v2348_v30 }
0x1796   :  { %v2350_v42 = vsel %vm3071_vm3, %v2456_v1, %v2941_v23 }
0x1797   :  { %2353 = vrot.lane.b32.xlu1 %v2350_v42, %s2960_s22  ;;  %v2351_v26 = vmul.f32 %v2350_v42, %v2087_v61 }
0x1809   :  { %v2354_v43 = vpop.permute.xlu1 %2353 }
0x180a   :  { %v2356_v7 = vmul.f32 %v2354_v43, %v2350_v42 }
0x180c   :  { %2358 = vrot.lane.b32.xlu0 %v2356_v7, %s2961_s23 }
0x1810   :  { %2374 = vrot.lane.b32.xlu0 %v2457_v9, %s2962_s26 }
0x187e   :  { %v2359_v32 = vpop.permute.xlu0 %2358 }
0x187f   :  { %v2361_v45 = vadd.f32 %v2359_v32, %v2351_v26 }
0x1881   :  { %2942 = vtanh.f32 %v2361_v45 }
0x1882   :  { %v2375_v38 = vpop.permute.xlu0 %2374 }
0x188e   :  { %v2943_v28 = vpop.eup %2942 }
0x188f   :  { %2364 = vrot.lane.b32.xlu1 %v2943_v28, %s2960_s22 }
0x1901   :  { %v2365_v29 = vpop.permute.xlu1 %2364 }
0x1902   :  { %v2367_v39 = vmul.f32 %v2365_v29, %v2350_v42 }
0x1904   :  { %v2377_v46 = vmul.f32 %v2375_v38, %v2367_v39 }
0x1906   :  { %2379 = vrot.lane.b32.xlu1 %v2377_v46, %s2961_s23 }
0x1978   :  { %v2380_v31 = vpop.permute.xlu1 %2379 }
0x1979   :  { %v2383_v37 = vsel %vm2382_vm5, %v2380_v31, 0.0 }
0x197a   :  { %2384 = vadd.xlane.f32.xlu0 %v2383_v37 }
0x1a03   :  { %v2385_v47 = vpop.xlane.xlu0 %2384 }
0x1a04   :  { %v2393_v41 = vadd.f32 %v2458_v40, %v2385_v47 }
0x1a06   :  { %2395 = vst.msk [vmem:[%s3630_s9] sm:$0x3] %vm2394_vm6, %v2393_v41 }

</bundles_post_ra>
